<compile_context>
chip_gen: v5e
topology: v5e:2x2
jax: 0.10.0
libtpu: 0.0.40
codegen_flags: <defaults>
</compile_context>

<pallas_src>
import functools

import jax
import jax.numpy as jnp
import numpy as np
from jax import lax
from jax.experimental import pallas as pl
from jax.experimental.pallas import tpu as pltpu

KSIZE = 7
PAD = KSIZE // 2


def _round_up(x, m):
    return ((x + m - 1) // m) * m


def _cbam_kernel(x_ref, w1t_ref, w2t_ref, b1_ref, b2_ref, wsp_ref, bsp_ref,
                 o_ref, pad_a_ref, pad_m_ref, *, W, HW_valid, LEFT):
    B, C, HWp = x_ref.shape
    PADF = PAD * W + PAD                      # flat halo width (3*W + 3)

    x = x_ref[...].astype(jnp.float32)        # (B, C, HWp)  lane-dense

    # ---------------- channel attention (MXU) ----------------
    # mean over the true H*W lanes (padding lanes are zero, so the sum is ok)
    avg_c = jnp.sum(x, axis=2) * (1.0 / HW_valid)               # (B, C)
    if HWp != HW_valid:
        lane = lax.broadcasted_iota(jnp.int32, (1, 1, HWp), 2)
        max_c = jnp.max(jnp.where(lane < HW_valid, x, -jnp.inf), axis=2)
    else:
        max_c = jnp.max(x, axis=2)                              # (B, C)

    b1 = b1_ref[...]                           # (1, Cr)
    w1t = w1t_ref[...]                         # (C, Cr)  fc1 weight, transposed
    ha = jnp.maximum(
        jnp.dot(avg_c, w1t, preferred_element_type=jnp.float32) + b1, 0.0)
    hm = jnp.maximum(
        jnp.dot(max_c, w1t, preferred_element_type=jnp.float32) + b1, 0.0)
    # fc2(avg) + fc2(max) = (h_avg + h_max) @ w2.T + 2*b2
    z = jnp.dot(ha + hm, w2t_ref[...], preferred_element_type=jnp.float32)
    ca = jax.nn.sigmoid(z + 2.0 * b2_ref[...])                  # (B, C)

    x1 = x * ca[:, :, None]                    # (B, C, HWp)

    # ---------------- spatial attention ----------------
    avg_s = jnp.mean(x1, axis=1)               # (B, HWp)  cross-channel mean
    max_s = jnp.max(x1, axis=1)                # (B, HWp)  cross-channel max
    # (padding lanes of x1 are exactly zero, so avg_s/max_s are zero there ->
    #  the interior store itself extends the zero halo past the real image.)

    # zero only the halo strips the taps actually read; done every step since
    # scratch is per-core and a program_id()==0 guard breaks under megacore.
    zl = jnp.zeros((B, PADF), jnp.float32)
    pad_a_ref[:, pl.ds(LEFT - PADF, PADF)] = zl
    pad_m_ref[:, pl.ds(LEFT - PADF, PADF)] = zl
    pad_a_ref[:, pl.ds(LEFT + HWp, PADF)] = zl
    pad_m_ref[:, pl.ds(LEFT + HWp, PADF)] = zl
    # lane-aligned (LEFT % 128 == 0, HWp % 128 == 0) unmasked interior stores
    pad_a_ref[:, pl.ds(LEFT, HWp)] = avg_s
    pad_m_ref[:, pl.ds(LEFT, HWp)] = max_s

    # 7x7 conv in the flattened domain: a (dy, dx) tap is a flat shift of
    # dy*W + dx; dy out-of-range rows hit the zero halo, dx row-wrap columns
    # are masked per dx.
    xcol = lax.broadcasted_iota(jnp.int32, (1, HWp), 1) % W

    acc = None
    for dxi in range(KSIZE):
        dx = dxi - PAD
        inner0 = None
        inner1 = None
        for dyi in range(KSIZE):
            dy = dyi - PAD
            start = LEFT + dy * W + dx                 # static offset
            wa = wsp_ref[dyi * KSIZE + dxi]            # avg-channel tap weight
            wm = wsp_ref[KSIZE * KSIZE + dyi * KSIZE + dxi]  # max-channel tap
            t = (wa * pad_a_ref[:, pl.ds(start, HWp)]
                 + wm * pad_m_ref[:, pl.ds(start, HWp)])
            if dyi % 2 == 0:
                inner0 = t if inner0 is None else inner0 + t
            else:
                inner1 = t if inner1 is None else inner1 + t
        inner = inner0 + inner1
        if dx != 0:
            cm = ((xcol >= -dx) & (xcol < W - dx)).astype(jnp.float32)
            inner = inner * cm
        acc = inner if acc is None else acc + inner

    attn = jax.nn.sigmoid(acc + bsp_ref[0])            # (B, HWp)
    o_ref[...] = (x1 * attn[:, None, :]).astype(o_ref.dtype)


def _tpu_caps():
    """Best-effort (VMEM bytes, tensorcores-per-chip); conservative fallback."""
    vmem = 64 * 1024 * 1024
    cores = 1
    try:
        info = pltpu.get_tpu_info()
        vmem = int(getattr(info, "vmem_capacity_bytes", vmem))
        for attr in ("num_tensorcores", "tensorcore_count", "num_cores",
                     "core_count_per_chip", "num_cores_per_chip"):
            v = getattr(info, attr, None)
            if v:
                cores = int(v)
                break
    except Exception:
        pass
    if cores == 1:
        try:  # heuristic: v7x has 2 TCs per chip
            kind = str(getattr(jax.devices()[0], "device_kind", "")).lower()
            if "v7" in kind:
                cores = 2
        except Exception:
            pass
    return min(vmem, 128 * 1024 * 1024), max(cores, 1)


def _pick_block(N, C, HWp, itemsize, vmem_bytes, num_cores):
    """Images per grid step, VMEM-budgeted and generation-aware."""
    # per image: double-buffered in+out HBM tiles (itemsize each) + f32 working
    # copies of x and x1 + flat spatial temporaries / pad scratch.
    per_img = C * HWp * (4 * itemsize + 2 * 4) + 16 * HWp * 4
    budget = max(4 * 1024 * 1024, int(vmem_bytes * 0.45))
    b = max(1, budget // per_img)
    if num_cores > 1 and N >= num_cores:
        # multi-TC chips (v7x): keep >= num_cores parallel grid steps
        b = min(b, max(1, N // num_cores))
    return max(1, min(b, N))


def cbam_pallas(x, w1, b1, w2, b2, wsp, bsp, *, block_n=None):
    """x: (N, C, H, W). w1:(Cr,C) b1:(Cr,) w2:(C,Cr) b2:(C,)
    wsp:(1,2,7,7) bsp:(1,)  -- matches the PyTorch module's parameters."""
    N, C, H, W = x.shape
    Cr = w1.shape[0]
    HW = H * W
    HWp = _round_up(HW, 128)                      # lane-dense, unmasked stores
    PADF = PAD * W + PAD
    LEFT = max(128, _round_up(PADF, 128))         # 128-aligned interior offset
    TOT = LEFT + HWp + LEFT                       # padded flat scratch width

    x_flat = x.reshape(N, C, HW)
    if HWp != HW:
        x_flat = jnp.pad(x_flat, ((0, 0), (0, 0), (0, HWp - HW)))

    vmem_bytes, num_cores = _tpu_caps()
    B = block_n or _pick_block(N, C, HWp, x.dtype.itemsize, vmem_bytes,
                               num_cores)
    B = max(1, min(B, N))
    Np = _round_up(N, B)                          # pad batch instead of B -> 1
    if Np != N:
        x_flat = jnp.pad(x_flat, ((0, Np - N), (0, 0), (0, 0)))

    w1t = jnp.transpose(w1)                       # (C, Cr)
    w2t = jnp.transpose(w2)                       # (Cr, C)
    b1r = b1.reshape(1, Cr)
    b2r = b2.reshape(1, C)
    wsp_flat = wsp.reshape(2 * KSIZE * KSIZE)     # [c*49 + ky*7 + kx]
    bsp_r = bsp.reshape(1)

    kernel = functools.partial(_cbam_kernel, W=W, HW_valid=HW, LEFT=LEFT)

    grid_spec = pltpu.PrefetchScalarGridSpec(
        num_scalar_prefetch=0,
        grid=(Np // B,),
        in_specs=[
            pl.BlockSpec((B, C, HWp), lambda n: (n, 0, 0)),
            pl.BlockSpec((C, Cr), lambda n: (0, 0)),
            pl.BlockSpec((Cr, C), lambda n: (0, 0)),
            pl.BlockSpec((1, Cr), lambda n: (0, 0)),
            pl.BlockSpec((1, C), lambda n: (0, 0)),
            pl.BlockSpec(memory_space=pltpu.MemorySpace.SMEM),  # wsp (98,)
            pl.BlockSpec(memory_space=pltpu.MemorySpace.SMEM),  # bsp (1,)
        ],
        out_specs=pl.BlockSpec((B, C, HWp), lambda n: (n, 0, 0)),
        scratch_shapes=[
            pltpu.VMEM((B, TOT), jnp.float32),    # padded avg map (flat)
            pltpu.VMEM((B, TOT), jnp.float32),    # padded max map (flat)
        ],
    )

    flops = (2 * Np * C * HWp                    # two scaling passes
             + 4 * KSIZE * KSIZE * Np * HWp      # 7x7 conv taps (2 ch, mul+add)
             + 4 * Np * C * Cr)                  # channel MLP matmuls
    cost = pl.CostEstimate(
        flops=int(flops),
        transcendentals=int(Np * (C + HWp)),
        bytes_accessed=int(2 * Np * C * HWp * x.dtype.itemsize),
    )

    # generation-aware scoped-VMEM limit (~48 MiB on 64 MiB v7x, ~96 MiB on
    # 128 MiB v5e/v6e; conservative fallback when capacity is unknown).
    vmem_limit = int(min(vmem_bytes * 3 // 4, 100 * 1024 * 1024))
    vmem_limit = max(vmem_limit, 32 * 1024 * 1024)

    out_flat = pl.pallas_call(
        kernel,
        out_shape=jax.ShapeDtypeStruct((Np, C, HWp), x.dtype),
        grid_spec=grid_spec,
        compiler_params=pltpu.CompilerParams(
            dimension_semantics=("parallel",),
            vmem_limit_bytes=vmem_limit,
        ),
        cost_estimate=cost,
    )(x_flat, w1t, w2t, b1r, b2r, wsp_flat, bsp_r)

    return out_flat[:N, :, :HW].reshape(N, C, H, W)


def cbam_ref(x, w1, b1, w2, b2, wsp, bsp):
    """Pure-JAX reference matching the PyTorch forward."""
    avg = jnp.mean(x, axis=(2, 3))                # (N, C)
    mx = jnp.max(x, axis=(2, 3))                  # (N, C)

    def fc(v):
        h = jax.nn.relu(v @ w1.T + b1)
        return h @ w2.T + b2

    ca = jax.nn.sigmoid(fc(avg) + fc(mx))[:, :, None, None]
    x1 = x * ca
    avg_s = jnp.mean(x1, axis=1, keepdims=True)
    max_s = jnp.max(x1, axis=1, keepdims=True)
    s = jnp.concatenate([avg_s, max_s], axis=1)   # (N, 2, H, W)
    attn = jax.lax.conv_general_dilated(
        s, wsp, window_strides=(1, 1), padding=[(PAD, PAD), (PAD, PAD)],
        dimension_numbers=("NCHW", "OIHW", "NCHW")) + bsp.reshape(1, 1, 1, 1)
    attn = jax.nn.sigmoid(attn)
    return x1 * attn


def _make_params(key, C, ratio=16):
    Cr = max(1, C // ratio)
    ks = jax.random.split(key, 6)
    w1 = jax.random.normal(ks[0], (Cr, C), jnp.float32) * 0.1   # Conv2d(C,Cr,1).weight
    b1 = jax.random.normal(ks[1], (Cr,), jnp.float32) * 0.1
    w2 = jax.random.normal(ks[2], (C, Cr), jnp.float32) * 0.1   # Conv2d(Cr,C,1).weight
    b2 = jax.random.normal(ks[3], (C,), jnp.float32) * 0.1
    wsp = jax.random.normal(ks[4], (1, 2, KSIZE, KSIZE), jnp.float32) * 0.1
    bsp = jax.random.normal(ks[5], (1,), jnp.float32) * 0.1
    return w1, b1, w2, b2, wsp, bsp


if __name__ == "__main__":
    key = jax.random.PRNGKey(0)
    k_a, k_b, k_pa, k_pb = jax.random.split(key, 4)

    # Test 1: lane-aligned spatial size (H*W = 256), even batch.
    N, C, H, W = 2, 32, 16, 16
    x = jax.random.normal(k_a, (N, C, H, W), jnp.float32)
    params = _make_params(k_pa, C)
    out = jax.block_until_ready(cbam_pallas(x, *params))
    ref = cbam_ref(x, *params)
    np.testing.assert_allclose(np.asarray(out), np.asarray(ref),
                               rtol=1e-4, atol=1e-4)

    # Test 2: non-128-multiple H*W (14x14 -> padded to 256) and odd batch
    # (N=3 padded to 4 with block_n=2) to exercise both padding paths.
    N2, C2, H2, W2 = 3, 32, 14, 14
    x2 = jax.random.normal(k_b, (N2, C2, H2, W2), jnp.float32)
    params2 = _make_params(k_pb, C2)
    out2 = jax.block_until_ready(cbam_pallas(x2, *params2, block_n=2))
    ref2 = cbam_ref(x2, *params2)
    np.testing.assert_allclose(np.asarray(out2), np.asarray(ref2),
                               rtol=1e-4, atol=1e-4)

    print("KERNEL_OK")
</pallas_src>

<mosaic_0001>
module attributes {stable_mosaic.version = 11 : i64} {
  func.func @_cbam_kernel(%arg0: i32, %arg1: memref<2x32x256xf32, #tpu.memory_space<vmem>>, %arg2: memref<32x2xf32, #tpu.memory_space<vmem>>, %arg3: memref<2x32xf32, #tpu.memory_space<vmem>>, %arg4: memref<1x2xf32, #tpu.memory_space<vmem>>, %arg5: memref<1x32xf32, #tpu.memory_space<vmem>>, %arg6: memref<98xf32, #tpu.memory_space<smem>>, %arg7: memref<1xf32, #tpu.memory_space<smem>>, %arg8: memref<2x32x256xf32, #tpu.memory_space<vmem>>, %arg9: memref<2x512xf32, #tpu.memory_space<vmem>>, %arg10: memref<2x512xf32, #tpu.memory_space<vmem>>) attributes {dimension_semantics = [#tpu.dimension_semantics<parallel>], iteration_bounds = array<i64: 1>, scalar_prefetch = 0 : i64, scratch_operands = 2 : i64, tpu.core_type = #tpu.core_type<tc>, window_params = [{transform_indices = @transform_0, window_bounds = array<i64: 2, 32, 256>}, {pipeline_mode = #tpu.pipeline_mode<synchronous>, transform_indices = @transform_1, window_bounds = array<i64: 32, 2>}, {pipeline_mode = #tpu.pipeline_mode<synchronous>, transform_indices = @transform_2, window_bounds = array<i64: 2, 32>}, {pipeline_mode = #tpu.pipeline_mode<synchronous>, transform_indices = @transform_3, window_bounds = array<i64: 1, 2>}, {pipeline_mode = #tpu.pipeline_mode<synchronous>, transform_indices = @transform_4, window_bounds = array<i64: 1, 32>}, {transform_indices = @transform_5, window_bounds = array<i64: 98>}, {transform_indices = @transform_6, window_bounds = array<i64: 1>}, {transform_indices = @transform_7, window_bounds = array<i64: 2, 32, 256>}]} {
    %c0 = arith.constant 0 : index
    %c0_0 = arith.constant 0 : index
    %c0_1 = arith.constant 0 : index
    %0 = vector.load %arg1[%c0, %c0_0, %c0_1] : memref<2x32x256xf32, #tpu.memory_space<vmem>>, vector<2x32x256xf32>
    %cst = arith.constant dense<0.000000e+00> : vector<2x32xf32>
    %1 = vector.multi_reduction <add>, %0, %cst [2] : vector<2x32x256xf32> to vector<2x32xf32>
    %cst_2 = arith.constant 3.906250e-03 : f32
    %2 = vector.broadcast %cst_2 : f32 to vector<2x32xf32>
    %3 = arith.mulf %1, %2 : vector<2x32xf32>
    %cst_3 = arith.constant dense<0xFF800000> : vector<2x32xf32>
    %4 = vector.multi_reduction <maximumf>, %0, %cst_3 [2] : vector<2x32x256xf32> to vector<2x32xf32>
    %c0_4 = arith.constant 0 : index
    %c0_5 = arith.constant 0 : index
    %5 = vector.load %arg4[%c0_4, %c0_5] : memref<1x2xf32, #tpu.memory_space<vmem>>, vector<1x2xf32>
    %c0_6 = arith.constant 0 : index
    %c0_7 = arith.constant 0 : index
    %6 = vector.load %arg2[%c0_6, %c0_7] : memref<32x2xf32, #tpu.memory_space<vmem>>, vector<32x2xf32>
    %cst_8 = arith.constant dense<0.000000e+00> : vector<2x2xf32>
    %7 = tpu.matmul %3, %6, %cst_8 {dimension_numbers = #tpu.dot_dimension_numbers<[1], [0], [0], [1], [0, 0, 1, 1], [], []>} : vector<2x32xf32>, vector<32x2xf32>, vector<2x2xf32> -> vector<2x2xf32>
    %8 = vector.broadcast %5 : vector<1x2xf32> to vector<2x2xf32>
    %9 = arith.addf %7, %8 : vector<2x2xf32>
    %cst_9 = arith.constant 0.000000e+00 : f32
    %10 = vector.broadcast %cst_9 : f32 to vector<2x2xf32>
    %11 = arith.maximumf %9, %10 : vector<2x2xf32>
    %cst_10 = arith.constant dense<0.000000e+00> : vector<2x2xf32>
    %12 = tpu.matmul %4, %6, %cst_10 {dimension_numbers = #tpu.dot_dimension_numbers<[1], [0], [0], [1], [0, 0, 1, 1], [], []>} : vector<2x32xf32>, vector<32x2xf32>, vector<2x2xf32> -> vector<2x2xf32>
    %13 = vector.broadcast %5 : vector<1x2xf32> to vector<2x2xf32>
    %14 = arith.addf %12, %13 : vector<2x2xf32>
    %cst_11 = arith.constant 0.000000e+00 : f32
    %15 = vector.broadcast %cst_11 : f32 to vector<2x2xf32>
    %16 = arith.maximumf %14, %15 : vector<2x2xf32>
    %17 = arith.addf %11, %16 : vector<2x2xf32>
    %c0_12 = arith.constant 0 : index
    %c0_13 = arith.constant 0 : index
    %18 = vector.load %arg3[%c0_12, %c0_13] : memref<2x32xf32, #tpu.memory_space<vmem>>, vector<2x32xf32>
    %cst_14 = arith.constant dense<0.000000e+00> : vector<2x32xf32>
    %19 = tpu.matmul %17, %18, %cst_14 {dimension_numbers = #tpu.dot_dimension_numbers<[1], [0], [0], [1], [0, 0, 1, 1], [], []>} : vector<2x2xf32>, vector<2x32xf32>, vector<2x32xf32> -> vector<2x32xf32>
    %c0_15 = arith.constant 0 : index
    %c0_16 = arith.constant 0 : index
    %20 = vector.load %arg5[%c0_15, %c0_16] : memref<1x32xf32, #tpu.memory_space<vmem>>, vector<1x32xf32>
    %cst_17 = arith.constant 2.000000e+00 : f32
    %21 = vector.broadcast %cst_17 : f32 to vector<1x32xf32>
    %22 = arith.mulf %21, %20 : vector<1x32xf32>
    %23 = vector.broadcast %22 : vector<1x32xf32> to vector<2x32xf32>
    %24 = arith.addf %19, %23 : vector<2x32xf32>
    %25 = arith.negf %24 : vector<2x32xf32>
    %26 = math.exp %25 : vector<2x32xf32>
    %cst_18 = arith.constant 1.000000e+00 : f32
    %27 = vector.broadcast %cst_18 : f32 to vector<2x32xf32>
    %28 = arith.addf %27, %26 : vector<2x32xf32>
    %29 = arith.divf %27, %28 : vector<2x32xf32>
    %30 = vector.shape_cast %29 : vector<2x32xf32> to vector<2x32x1xf32>
    %31 = vector.broadcast %30 : vector<2x32x1xf32> to vector<2x32x256xf32>
    %32 = arith.mulf %0, %31 : vector<2x32x256xf32>
    %cst_19 = arith.constant dense<0.000000e+00> : vector<2x256xf32>
    %33 = vector.multi_reduction <add>, %32, %cst_19 [1] : vector<2x32x256xf32> to vector<2x256xf32>
    %cst_20 = arith.constant 3.200000e+01 : f32
    %34 = vector.broadcast %cst_20 : f32 to vector<2x256xf32>
    %35 = arith.divf %33, %34 : vector<2x256xf32>
    %cst_21 = arith.constant dense<0xFF800000> : vector<2x256xf32>
    %36 = vector.multi_reduction <maximumf>, %32, %cst_21 [1] : vector<2x32x256xf32> to vector<2x256xf32>
    %cst_22 = arith.constant 0.000000e+00 : f32
    %37 = vector.broadcast %cst_22 : f32 to vector<2x51xf32>
    %c0_23 = arith.constant 0 : index
    %c77 = arith.constant 77 : index
    %38 = vector.load %arg9[%c0_23, %c77] : memref<2x512xf32, #tpu.memory_space<vmem>>, vector<2x51xf32>
    tpu.vector_store %arg9[%c0_23, %c77], %37 {strides = array<i32>} : memref<2x512xf32, #tpu.memory_space<vmem>>, vector<2x51xf32>,
    %c0_24 = arith.constant 0 : index
    %c77_25 = arith.constant 77 : index
    %39 = vector.load %arg10[%c0_24, %c77_25] : memref<2x512xf32, #tpu.memory_space<vmem>>, vector<2x51xf32>
    tpu.vector_store %arg10[%c0_24, %c77_25], %37 {strides = array<i32>} : memref<2x512xf32, #tpu.memory_space<vmem>>, vector<2x51xf32>,
    %c0_26 = arith.constant 0 : index
    %c384 = arith.constant 384 : index
    %40 = vector.load %arg9[%c0_26, %c384] : memref<2x512xf32, #tpu.memory_space<vmem>>, vector<2x51xf32>
    tpu.vector_store %arg9[%c0_26, %c384], %37 {strides = array<i32>} : memref<2x512xf32, #tpu.memory_space<vmem>>, vector<2x51xf32>,
    %c0_27 = arith.constant 0 : index
    %c384_28 = arith.constant 384 : index
    %41 = vector.load %arg10[%c0_27, %c384_28] : memref<2x512xf32, #tpu.memory_space<vmem>>, vector<2x51xf32>
    tpu.vector_store %arg10[%c0_27, %c384_28], %37 {strides = array<i32>} : memref<2x512xf32, #tpu.memory_space<vmem>>, vector<2x51xf32>,
    %c0_29 = arith.constant 0 : index
    %c128 = arith.constant 128 : index
    %42 = vector.load %arg9[%c0_29, %c128] : memref<2x512xf32, #tpu.memory_space<vmem>>, vector<2x256xf32>
    tpu.vector_store %arg9[%c0_29, %c128], %35 {strides = array<i32>} : memref<2x512xf32, #tpu.memory_space<vmem>>, vector<2x256xf32>,
    %c0_30 = arith.constant 0 : index
    %c128_31 = arith.constant 128 : index
    %43 = vector.load %arg10[%c0_30, %c128_31] : memref<2x512xf32, #tpu.memory_space<vmem>>, vector<2x256xf32>
    tpu.vector_store %arg10[%c0_30, %c128_31], %36 {strides = array<i32>} : memref<2x512xf32, #tpu.memory_space<vmem>>, vector<2x256xf32>,
    %44 = tpu.iota {dimensions = array<i32: 1>} : vector<1x256xi32>
    %c16_i32 = arith.constant 16 : i32
    %c0_i32 = arith.constant 0 : i32
    %45 = arith.cmpi eq, %c16_i32, %c0_i32 : i32
    %c1_i32 = arith.constant 1 : i32
    %46 = arith.select %45, %c1_i32, %c16_i32 : i32
    %47 = vector.broadcast %46 : i32 to vector<1x256xi32>
    %48 = arith.remsi %44, %47 : vector<1x256xi32>
    %c0_i32_32 = arith.constant 0 : i32
    %49 = vector.broadcast %c0_i32_32 : i32 to vector<1x256xi32>
    %50 = arith.cmpi ne, %48, %49 : vector<1x256xi32>
    %c0_i32_33 = arith.constant 0 : i32
    %51 = vector.broadcast %c0_i32_33 : i32 to vector<1x256xi32>
    %52 = arith.cmpi slt, %48, %51 : vector<1x256xi32>
    %c0_i32_34 = arith.constant 0 : i32
    %53 = arith.cmpi slt, %46, %c0_i32_34 : i32
    %54 = vector.broadcast %53 : i1 to vector<1x256xi1>
    %55 = vector.broadcast %54 : vector<1x256xi1> to vector<1x256xi1>
    %56 = arith.xori %52, %55 : vector<1x256xi1>
    %57 = arith.andi %56, %50 : vector<1x256xi1>
    %58 = vector.broadcast %46 : i32 to vector<1x256xi32>
    %59 = arith.addi %48, %58 : vector<1x256xi32>
    %60 = arith.select %57, %59, %48 : vector<1x256xi1>, vector<1x256xi32>
    %c0_35 = arith.constant 0 : index
    %61 = memref.load %arg6[%c0_35] : memref<98xf32, #tpu.memory_space<smem>>
    %c49 = arith.constant 49 : index
    %62 = memref.load %arg6[%c49] : memref<98xf32, #tpu.memory_space<smem>>
    %c0_36 = arith.constant 0 : index
    %c77_37 = arith.constant 77 : index
    %63 = vector.load %arg9[%c0_36, %c77_37] : memref<2x512xf32, #tpu.memory_space<vmem>>, vector<2x256xf32>
    %64 = vector.broadcast %61 : f32 to vector<2x256xf32>
    %65 = arith.mulf %64, %63 : vector<2x256xf32>
    %c0_38 = arith.constant 0 : index
    %c77_39 = arith.constant 77 : index
    %66 = vector.load %arg10[%c0_38, %c77_39] : memref<2x512xf32, #tpu.memory_space<vmem>>, vector<2x256xf32>
    %67 = vector.broadcast %62 : f32 to vector<2x256xf32>
    %68 = arith.mulf %67, %66 : vector<2x256xf32>
    %69 = arith.addf %65, %68 : vector<2x256xf32>
    %c7 = arith.constant 7 : index
    %70 = memref.load %arg6[%c7] : memref<98xf32, #tpu.memory_space<smem>>
    %c56 = arith.constant 56 : index
    %71 = memref.load %arg6[%c56] : memref<98xf32, #tpu.memory_space<smem>>
    %c0_40 = arith.constant 0 : index
    %c93 = arith.constant 93 : index
    %72 = vector.load %arg9[%c0_40, %c93] : memref<2x512xf32, #tpu.memory_space<vmem>>, vector<2x256xf32>
    %73 = vector.broadcast %70 : f32 to vector<2x256xf32>
    %74 = arith.mulf %73, %72 : vector<2x256xf32>
    %c0_41 = arith.constant 0 : index
    %c93_42 = arith.constant 93 : index
    %75 = vector.load %arg10[%c0_41, %c93_42] : memref<2x512xf32, #tpu.memory_space<vmem>>, vector<2x256xf32>
    %76 = vector.broadcast %71 : f32 to vector<2x256xf32>
    %77 = arith.mulf %76, %75 : vector<2x256xf32>
    %78 = arith.addf %74, %77 : vector<2x256xf32>
    %c14 = arith.constant 14 : index
    %79 = memref.load %arg6[%c14] : memref<98xf32, #tpu.memory_space<smem>>
    %c63 = arith.constant 63 : index
    %80 = memref.load %arg6[%c63] : memref<98xf32, #tpu.memory_space<smem>>
    %c0_43 = arith.constant 0 : index
    %c109 = arith.constant 109 : index
    %81 = vector.load %arg9[%c0_43, %c109] : memref<2x512xf32, #tpu.memory_space<vmem>>, vector<2x256xf32>
    %82 = vector.broadcast %79 : f32 to vector<2x256xf32>
    %83 = arith.mulf %82, %81 : vector<2x256xf32>
    %c0_44 = arith.constant 0 : index
    %c109_45 = arith.constant 109 : index
    %84 = vector.load %arg10[%c0_44, %c109_45] : memref<2x512xf32, #tpu.memory_space<vmem>>, vector<2x256xf32>
    %85 = vector.broadcast %80 : f32 to vector<2x256xf32>
    %86 = arith.mulf %85, %84 : vector<2x256xf32>
    %87 = arith.addf %83, %86 : vector<2x256xf32>
    %88 = arith.addf %69, %87 : vector<2x256xf32>
    %c21 = arith.constant 21 : index
    %89 = memref.load %arg6[%c21] : memref<98xf32, #tpu.memory_space<smem>>
    %c70 = arith.constant 70 : index
    %90 = memref.load %arg6[%c70] : memref<98xf32, #tpu.memory_space<smem>>
    %c0_46 = arith.constant 0 : index
    %c125 = arith.constant 125 : index
    %91 = vector.load %arg9[%c0_46, %c125] : memref<2x512xf32, #tpu.memory_space<vmem>>, vector<2x256xf32>
    %92 = vector.broadcast %89 : f32 to vector<2x256xf32>
    %93 = arith.mulf %92, %91 : vector<2x256xf32>
    %c0_47 = arith.constant 0 : index
    %c125_48 = arith.constant 125 : index
    %94 = vector.load %arg10[%c0_47, %c125_48] : memref<2x512xf32, #tpu.memory_space<vmem>>, vector<2x256xf32>
    %95 = vector.broadcast %90 : f32 to vector<2x256xf32>
    %96 = arith.mulf %95, %94 : vector<2x256xf32>
    %97 = arith.addf %93, %96 : vector<2x256xf32>
    %98 = arith.addf %78, %97 : vector<2x256xf32>
    %c28 = arith.constant 28 : index
    %99 = memref.load %arg6[%c28] : memref<98xf32, #tpu.memory_space<smem>>
    %c77_49 = arith.constant 77 : index
    %100 = memref.load %arg6[%c77_49] : memref<98xf32, #tpu.memory_space<smem>>
    %c0_50 = arith.constant 0 : index
    %c141 = arith.constant 141 : index
    %101 = vector.load %arg9[%c0_50, %c141] : memref<2x512xf32, #tpu.memory_space<vmem>>, vector<2x256xf32>
    %102 = vector.broadcast %99 : f32 to vector<2x256xf32>
    %103 = arith.mulf %102, %101 : vector<2x256xf32>
    %c0_51 = arith.constant 0 : index
    %c141_52 = arith.constant 141 : index
    %104 = vector.load %arg10[%c0_51, %c141_52] : memref<2x512xf32, #tpu.memory_space<vmem>>, vector<2x256xf32>
    %105 = vector.broadcast %100 : f32 to vector<2x256xf32>
    %106 = arith.mulf %105, %104 : vector<2x256xf32>
    %107 = arith.addf %103, %106 : vector<2x256xf32>
    %108 = arith.addf %88, %107 : vector<2x256xf32>
    %c35 = arith.constant 35 : index
    %109 = memref.load %arg6[%c35] : memref<98xf32, #tpu.memory_space<smem>>
    %c84 = arith.constant 84 : index
    %110 = memref.load %arg6[%c84] : memref<98xf32, #tpu.memory_space<smem>>
    %c0_53 = arith.constant 0 : index
    %c157 = arith.constant 157 : index
    %111 = vector.load %arg9[%c0_53, %c157] : memref<2x512xf32, #tpu.memory_space<vmem>>, vector<2x256xf32>
    %112 = vector.broadcast %109 : f32 to vector<2x256xf32>
    %113 = arith.mulf %112, %111 : vector<2x256xf32>
    %c0_54 = arith.constant 0 : index
    %c157_55 = arith.constant 157 : index
    %114 = vector.load %arg10[%c0_54, %c157_55] : memref<2x512xf32, #tpu.memory_space<vmem>>, vector<2x256xf32>
    %115 = vector.broadcast %110 : f32 to vector<2x256xf32>
    %116 = arith.mulf %115, %114 : vector<2x256xf32>
    %117 = arith.addf %113, %116 : vector<2x256xf32>
    %118 = arith.addf %98, %117 : vector<2x256xf32>
    %c42 = arith.constant 42 : index
    %119 = memref.load %arg6[%c42] : memref<98xf32, #tpu.memory_space<smem>>
    %c91 = arith.constant 91 : index
    %120 = memref.load %arg6[%c91] : memref<98xf32, #tpu.memory_space<smem>>
    %c0_56 = arith.constant 0 : index
    %c173 = arith.constant 173 : index
    %121 = vector.load %arg9[%c0_56, %c173] : memref<2x512xf32, #tpu.memory_space<vmem>>, vector<2x256xf32>
    %122 = vector.broadcast %119 : f32 to vector<2x256xf32>
    %123 = arith.mulf %122, %121 : vector<2x256xf32>
    %c0_57 = arith.constant 0 : index
    %c173_58 = arith.constant 173 : index
    %124 = vector.load %arg10[%c0_57, %c173_58] : memref<2x512xf32, #tpu.memory_space<vmem>>, vector<2x256xf32>
    %125 = vector.broadcast %120 : f32 to vector<2x256xf32>
    %126 = arith.mulf %125, %124 : vector<2x256xf32>
    %127 = arith.addf %123, %126 : vector<2x256xf32>
    %128 = arith.addf %108, %127 : vector<2x256xf32>
    %129 = arith.addf %128, %118 : vector<2x256xf32>
    %c3_i32 = arith.constant 3 : i32
    %130 = vector.broadcast %c3_i32 : i32 to vector<1x256xi32>
    %131 = arith.cmpi sge, %60, %130 : vector<1x256xi32>
    %c19_i32 = arith.constant 19 : i32
    %132 = vector.broadcast %c19_i32 : i32 to vector<1x256xi32>
    %133 = arith.cmpi slt, %60, %132 : vector<1x256xi32>
    %134 = arith.andi %131, %133 : vector<1x256xi1>
    %135 = arith.extui %134 : vector<1x256xi1> to vector<1x256xi32>
    %136 = arith.sitofp %135 : vector<1x256xi32> to vector<1x256xf32>
    %137 = vector.broadcast %136 : vector<1x256xf32> to vector<2x256xf32>
    %138 = arith.mulf %129, %137 : vector<2x256xf32>
    %c1 = arith.constant 1 : index
    %139 = memref.load %arg6[%c1] : memref<98xf32, #tpu.memory_space<smem>>
    %c50 = arith.constant 50 : index
    %140 = memref.load %arg6[%c50] : memref<98xf32, #tpu.memory_space<smem>>
    %c0_59 = arith.constant 0 : index
    %c78 = arith.constant 78 : index
    %141 = vector.load %arg9[%c0_59, %c78] : memref<2x512xf32, #tpu.memory_space<vmem>>, vector<2x256xf32>
    %142 = vector.broadcast %139 : f32 to vector<2x256xf32>
    %143 = arith.mulf %142, %141 : vector<2x256xf32>
    %c0_60 = arith.constant 0 : index
    %c78_61 = arith.constant 78 : index
    %144 = vector.load %arg10[%c0_60, %c78_61] : memref<2x512xf32, #tpu.memory_space<vmem>>, vector<2x256xf32>
    %145 = vector.broadcast %140 : f32 to vector<2x256xf32>
    %146 = arith.mulf %145, %144 : vector<2x256xf32>
    %147 = arith.addf %143, %146 : vector<2x256xf32>
    %c8 = arith.constant 8 : index
    %148 = memref.load %arg6[%c8] : memref<98xf32, #tpu.memory_space<smem>>
    %c57 = arith.constant 57 : index
    %149 = memref.load %arg6[%c57] : memref<98xf32, #tpu.memory_space<smem>>
    %c0_62 = arith.constant 0 : index
    %c94 = arith.constant 94 : index
    %150 = vector.load %arg9[%c0_62, %c94] : memref<2x512xf32, #tpu.memory_space<vmem>>, vector<2x256xf32>
    %151 = vector.broadcast %148 : f32 to vector<2x256xf32>
    %152 = arith.mulf %151, %150 : vector<2x256xf32>
    %c0_63 = arith.constant 0 : index
    %c94_64 = arith.constant 94 : index
    %153 = vector.load %arg10[%c0_63, %c94_64] : memref<2x512xf32, #tpu.memory_space<vmem>>, vector<2x256xf32>
    %154 = vector.broadcast %149 : f32 to vector<2x256xf32>
    %155 = arith.mulf %154, %153 : vector<2x256xf32>
    %156 = arith.addf %152, %155 : vector<2x256xf32>
    %c15 = arith.constant 15 : index
    %157 = memref.load %arg6[%c15] : memref<98xf32, #tpu.memory_space<smem>>
    %c64 = arith.constant 64 : index
    %158 = memref.load %arg6[%c64] : memref<98xf32, #tpu.memory_space<smem>>
    %c0_65 = arith.constant 0 : index
    %c110 = arith.constant 110 : index
    %159 = vector.load %arg9[%c0_65, %c110] : memref<2x512xf32, #tpu.memory_space<vmem>>, vector<2x256xf32>
    %160 = vector.broadcast %157 : f32 to vector<2x256xf32>
    %161 = arith.mulf %160, %159 : vector<2x256xf32>
    %c0_66 = arith.constant 0 : index
    %c110_67 = arith.constant 110 : index
    %162 = vector.load %arg10[%c0_66, %c110_67] : memref<2x512xf32, #tpu.memory_space<vmem>>, vector<2x256xf32>
    %163 = vector.broadcast %158 : f32 to vector<2x256xf32>
    %164 = arith.mulf %163, %162 : vector<2x256xf32>
    %165 = arith.addf %161, %164 : vector<2x256xf32>
    %166 = arith.addf %147, %165 : vector<2x256xf32>
    %c22 = arith.constant 22 : index
    %167 = memref.load %arg6[%c22] : memref<98xf32, #tpu.memory_space<smem>>
    %c71 = arith.constant 71 : index
    %168 = memref.load %arg6[%c71] : memref<98xf32, #tpu.memory_space<smem>>
    %c0_68 = arith.constant 0 : index
    %c126 = arith.constant 126 : index
    %169 = vector.load %arg9[%c0_68, %c126] : memref<2x512xf32, #tpu.memory_space<vmem>>, vector<2x256xf32>
    %170 = vector.broadcast %167 : f32 to vector<2x256xf32>
    %171 = arith.mulf %170, %169 : vector<2x256xf32>
    %c0_69 = arith.constant 0 : index
    %c126_70 = arith.constant 126 : index
    %172 = vector.load %arg10[%c0_69, %c126_70] : memref<2x512xf32, #tpu.memory_space<vmem>>, vector<2x256xf32>
    %173 = vector.broadcast %168 : f32 to vector<2x256xf32>
    %174 = arith.mulf %173, %172 : vector<2x256xf32>
    %175 = arith.addf %171, %174 : vector<2x256xf32>
    %176 = arith.addf %156, %175 : vector<2x256xf32>
    %c29 = arith.constant 29 : index
    %177 = memref.load %arg6[%c29] : memref<98xf32, #tpu.memory_space<smem>>
    %c78_71 = arith.constant 78 : index
    %178 = memref.load %arg6[%c78_71] : memref<98xf32, #tpu.memory_space<smem>>
    %c0_72 = arith.constant 0 : index
    %c142 = arith.constant 142 : index
    %179 = vector.load %arg9[%c0_72, %c142] : memref<2x512xf32, #tpu.memory_space<vmem>>, vector<2x256xf32>
    %180 = vector.broadcast %177 : f32 to vector<2x256xf32>
    %181 = arith.mulf %180, %179 : vector<2x256xf32>
    %c0_73 = arith.constant 0 : index
    %c142_74 = arith.constant 142 : index
    %182 = vector.load %arg10[%c0_73, %c142_74] : memref<2x512xf32, #tpu.memory_space<vmem>>, vector<2x256xf32>
    %183 = vector.broadcast %178 : f32 to vector<2x256xf32>
    %184 = arith.mulf %183, %182 : vector<2x256xf32>
    %185 = arith.addf %181, %184 : vector<2x256xf32>
    %186 = arith.addf %166, %185 : vector<2x256xf32>
    %c36 = arith.constant 36 : index
    %187 = memref.load %arg6[%c36] : memref<98xf32, #tpu.memory_space<smem>>
    %c85 = arith.constant 85 : index
    %188 = memref.load %arg6[%c85] : memref<98xf32, #tpu.memory_space<smem>>
    %c0_75 = arith.constant 0 : index
    %c158 = arith.constant 158 : index
    %189 = vector.load %arg9[%c0_75, %c158] : memref<2x512xf32, #tpu.memory_space<vmem>>, vector<2x256xf32>
    %190 = vector.broadcast %187 : f32 to vector<2x256xf32>
    %191 = arith.mulf %190, %189 : vector<2x256xf32>
    %c0_76 = arith.constant 0 : index
    %c158_77 = arith.constant 158 : index
    %192 = vector.load %arg10[%c0_76, %c158_77] : memref<2x512xf32, #tpu.memory_space<vmem>>, vector<2x256xf32>
    %193 = vector.broadcast %188 : f32 to vector<2x256xf32>
    %194 = arith.mulf %193, %192 : vector<2x256xf32>
    %195 = arith.addf %191, %194 : vector<2x256xf32>
    %196 = arith.addf %176, %195 : vector<2x256xf32>
    %c43 = arith.constant 43 : index
    %197 = memref.load %arg6[%c43] : memref<98xf32, #tpu.memory_space<smem>>
    %c92 = arith.constant 92 : index
    %198 = memref.load %arg6[%c92] : memref<98xf32, #tpu.memory_space<smem>>
    %c0_78 = arith.constant 0 : index
    %c174 = arith.constant 174 : index
    %199 = vector.load %arg9[%c0_78, %c174] : memref<2x512xf32, #tpu.memory_space<vmem>>, vector<2x256xf32>
    %200 = vector.broadcast %197 : f32 to vector<2x256xf32>
    %201 = arith.mulf %200, %199 : vector<2x256xf32>
    %c0_79 = arith.constant 0 : index
    %c174_80 = arith.constant 174 : index
    %202 = vector.load %arg10[%c0_79, %c174_80] : memref<2x512xf32, #tpu.memory_space<vmem>>, vector<2x256xf32>
    %203 = vector.broadcast %198 : f32 to vector<2x256xf32>
    %204 = arith.mulf %203, %202 : vector<2x256xf32>
    %205 = arith.addf %201, %204 : vector<2x256xf32>
    %206 = arith.addf %186, %205 : vector<2x256xf32>
    %207 = arith.addf %206, %196 : vector<2x256xf32>
    %c2_i32 = arith.constant 2 : i32
    %208 = vector.broadcast %c2_i32 : i32 to vector<1x256xi32>
    %209 = arith.cmpi sge, %60, %208 : vector<1x256xi32>
    %c18_i32 = arith.constant 18 : i32
    %210 = vector.broadcast %c18_i32 : i32 to vector<1x256xi32>
    %211 = arith.cmpi slt, %60, %210 : vector<1x256xi32>
    %212 = arith.andi %209, %211 : vector<1x256xi1>
    %213 = arith.extui %212 : vector<1x256xi1> to vector<1x256xi32>
    %214 = arith.sitofp %213 : vector<1x256xi32> to vector<1x256xf32>
    %215 = vector.broadcast %214 : vector<1x256xf32> to vector<2x256xf32>
    %216 = arith.mulf %207, %215 : vector<2x256xf32>
    %217 = arith.addf %138, %216 : vector<2x256xf32>
    %c2 = arith.constant 2 : index
    %218 = memref.load %arg6[%c2] : memref<98xf32, #tpu.memory_space<smem>>
    %c51 = arith.constant 51 : index
    %219 = memref.load %arg6[%c51] : memref<98xf32, #tpu.memory_space<smem>>
    %c0_81 = arith.constant 0 : index
    %c79 = arith.constant 79 : index
    %220 = vector.load %arg9[%c0_81, %c79] : memref<2x512xf32, #tpu.memory_space<vmem>>, vector<2x256xf32>
    %221 = vector.broadcast %218 : f32 to vector<2x256xf32>
    %222 = arith.mulf %221, %220 : vector<2x256xf32>
    %c0_82 = arith.constant 0 : index
    %c79_83 = arith.constant 79 : index
    %223 = vector.load %arg10[%c0_82, %c79_83] : memref<2x512xf32, #tpu.memory_space<vmem>>, vector<2x256xf32>
    %224 = vector.broadcast %219 : f32 to vector<2x256xf32>
    %225 = arith.mulf %224, %223 : vector<2x256xf32>
    %226 = arith.addf %222, %225 : vector<2x256xf32>
    %c9 = arith.constant 9 : index
    %227 = memref.load %arg6[%c9] : memref<98xf32, #tpu.memory_space<smem>>
    %c58 = arith.constant 58 : index
    %228 = memref.load %arg6[%c58] : memref<98xf32, #tpu.memory_space<smem>>
    %c0_84 = arith.constant 0 : index
    %c95 = arith.constant 95 : index
    %229 = vector.load %arg9[%c0_84, %c95] : memref<2x512xf32, #tpu.memory_space<vmem>>, vector<2x256xf32>
    %230 = vector.broadcast %227 : f32 to vector<2x256xf32>
    %231 = arith.mulf %230, %229 : vector<2x256xf32>
    %c0_85 = arith.constant 0 : index
    %c95_86 = arith.constant 95 : index
    %232 = vector.load %arg10[%c0_85, %c95_86] : memref<2x512xf32, #tpu.memory_space<vmem>>, vector<2x256xf32>
    %233 = vector.broadcast %228 : f32 to vector<2x256xf32>
    %234 = arith.mulf %233, %232 : vector<2x256xf32>
    %235 = arith.addf %231, %234 : vector<2x256xf32>
    %c16 = arith.constant 16 : index
    %236 = memref.load %arg6[%c16] : memref<98xf32, #tpu.memory_space<smem>>
    %c65 = arith.constant 65 : index
    %237 = memref.load %arg6[%c65] : memref<98xf32, #tpu.memory_space<smem>>
    %c0_87 = arith.constant 0 : index
    %c111 = arith.constant 111 : index
    %238 = vector.load %arg9[%c0_87, %c111] : memref<2x512xf32, #tpu.memory_space<vmem>>, vector<2x256xf32>
    %239 = vector.broadcast %236 : f32 to vector<2x256xf32>
    %240 = arith.mulf %239, %238 : vector<2x256xf32>
    %c0_88 = arith.constant 0 : index
    %c111_89 = arith.constant 111 : index
    %241 = vector.load %arg10[%c0_88, %c111_89] : memref<2x512xf32, #tpu.memory_space<vmem>>, vector<2x256xf32>
    %242 = vector.broadcast %237 : f32 to vector<2x256xf32>
    %243 = arith.mulf %242, %241 : vector<2x256xf32>
    %244 = arith.addf %240, %243 : vector<2x256xf32>
    %245 = arith.addf %226, %244 : vector<2x256xf32>
    %c23 = arith.constant 23 : index
    %246 = memref.load %arg6[%c23] : memref<98xf32, #tpu.memory_space<smem>>
    %c72 = arith.constant 72 : index
    %247 = memref.load %arg6[%c72] : memref<98xf32, #tpu.memory_space<smem>>
    %c0_90 = arith.constant 0 : index
    %c127 = arith.constant 127 : index
    %248 = vector.load %arg9[%c0_90, %c127] : memref<2x512xf32, #tpu.memory_space<vmem>>, vector<2x256xf32>
    %249 = vector.broadcast %246 : f32 to vector<2x256xf32>
    %250 = arith.mulf %249, %248 : vector<2x256xf32>
    %c0_91 = arith.constant 0 : index
    %c127_92 = arith.constant 127 : index
    %251 = vector.load %arg10[%c0_91, %c127_92] : memref<2x512xf32, #tpu.memory_space<vmem>>, vector<2x256xf32>
    %252 = vector.broadcast %247 : f32 to vector<2x256xf32>
    %253 = arith.mulf %252, %251 : vector<2x256xf32>
    %254 = arith.addf %250, %253 : vector<2x256xf32>
    %255 = arith.addf %235, %254 : vector<2x256xf32>
    %c30 = arith.constant 30 : index
    %256 = memref.load %arg6[%c30] : memref<98xf32, #tpu.memory_space<smem>>
    %c79_93 = arith.constant 79 : index
    %257 = memref.load %arg6[%c79_93] : memref<98xf32, #tpu.memory_space<smem>>
    %c0_94 = arith.constant 0 : index
    %c143 = arith.constant 143 : index
    %258 = vector.load %arg9[%c0_94, %c143] : memref<2x512xf32, #tpu.memory_space<vmem>>, vector<2x256xf32>
    %259 = vector.broadcast %256 : f32 to vector<2x256xf32>
    %260 = arith.mulf %259, %258 : vector<2x256xf32>
    %c0_95 = arith.constant 0 : index
    %c143_96 = arith.constant 143 : index
    %261 = vector.load %arg10[%c0_95, %c143_96] : memref<2x512xf32, #tpu.memory_space<vmem>>, vector<2x256xf32>
    %262 = vector.broadcast %257 : f32 to vector<2x256xf32>
    %263 = arith.mulf %262, %261 : vector<2x256xf32>
    %264 = arith.addf %260, %263 : vector<2x256xf32>
    %265 = arith.addf %245, %264 : vector<2x256xf32>
    %c37 = arith.constant 37 : index
    %266 = memref.load %arg6[%c37] : memref<98xf32, #tpu.memory_space<smem>>
    %c86 = arith.constant 86 : index
    %267 = memref.load %arg6[%c86] : memref<98xf32, #tpu.memory_space<smem>>
    %c0_97 = arith.constant 0 : index
    %c159 = arith.constant 159 : index
    %268 = vector.load %arg9[%c0_97, %c159] : memref<2x512xf32, #tpu.memory_space<vmem>>, vector<2x256xf32>
    %269 = vector.broadcast %266 : f32 to vector<2x256xf32>
    %270 = arith.mulf %269, %268 : vector<2x256xf32>
    %c0_98 = arith.constant 0 : index
    %c159_99 = arith.constant 159 : index
    %271 = vector.load %arg10[%c0_98, %c159_99] : memref<2x512xf32, #tpu.memory_space<vmem>>, vector<2x256xf32>
    %272 = vector.broadcast %267 : f32 to vector<2x256xf32>
    %273 = arith.mulf %272, %271 : vector<2x256xf32>
    %274 = arith.addf %270, %273 : vector<2x256xf32>
    %275 = arith.addf %255, %274 : vector<2x256xf32>
    %c44 = arith.constant 44 : index
    %276 = memref.load %arg6[%c44] : memref<98xf32, #tpu.memory_space<smem>>
    %c93_100 = arith.constant 93 : index
    %277 = memref.load %arg6[%c93_100] : memref<98xf32, #tpu.memory_space<smem>>
    %c0_101 = arith.constant 0 : index
    %c175 = arith.constant 175 : index
    %278 = vector.load %arg9[%c0_101, %c175] : memref<2x512xf32, #tpu.memory_space<vmem>>, vector<2x256xf32>
    %279 = vector.broadcast %276 : f32 to vector<2x256xf32>
    %280 = arith.mulf %279, %278 : vector<2x256xf32>
    %c0_102 = arith.constant 0 : index
    %c175_103 = arith.constant 175 : index
    %281 = vector.load %arg10[%c0_102, %c175_103] : memref<2x512xf32, #tpu.memory_space<vmem>>, vector<2x256xf32>
    %282 = vector.broadcast %277 : f32 to vector<2x256xf32>
    %283 = arith.mulf %282, %281 : vector<2x256xf32>
    %284 = arith.addf %280, %283 : vector<2x256xf32>
    %285 = arith.addf %265, %284 : vector<2x256xf32>
    %286 = arith.addf %285, %275 : vector<2x256xf32>
    %c1_i32_104 = arith.constant 1 : i32
    %287 = vector.broadcast %c1_i32_104 : i32 to vector<1x256xi32>
    %288 = arith.cmpi sge, %60, %287 : vector<1x256xi32>
    %c17_i32 = arith.constant 17 : i32
    %289 = vector.broadcast %c17_i32 : i32 to vector<1x256xi32>
    %290 = arith.cmpi slt, %60, %289 : vector<1x256xi32>
    %291 = arith.andi %288, %290 : vector<1x256xi1>
    %292 = arith.extui %291 : vector<1x256xi1> to vector<1x256xi32>
    %293 = arith.sitofp %292 : vector<1x256xi32> to vector<1x256xf32>
    %294 = vector.broadcast %293 : vector<1x256xf32> to vector<2x256xf32>
    %295 = arith.mulf %286, %294 : vector<2x256xf32>
    %296 = arith.addf %217, %295 : vector<2x256xf32>
    %c3 = arith.constant 3 : index
    %297 = memref.load %arg6[%c3] : memref<98xf32, #tpu.memory_space<smem>>
    %c52 = arith.constant 52 : index
    %298 = memref.load %arg6[%c52] : memref<98xf32, #tpu.memory_space<smem>>
    %c0_105 = arith.constant 0 : index
    %c80 = arith.constant 80 : index
    %299 = vector.load %arg9[%c0_105, %c80] : memref<2x512xf32, #tpu.memory_space<vmem>>, vector<2x256xf32>
    %300 = vector.broadcast %297 : f32 to vector<2x256xf32>
    %301 = arith.mulf %300, %299 : vector<2x256xf32>
    %c0_106 = arith.constant 0 : index
    %c80_107 = arith.constant 80 : index
    %302 = vector.load %arg10[%c0_106, %c80_107] : memref<2x512xf32, #tpu.memory_space<vmem>>, vector<2x256xf32>
    %303 = vector.broadcast %298 : f32 to vector<2x256xf32>
    %304 = arith.mulf %303, %302 : vector<2x256xf32>
    %305 = arith.addf %301, %304 : vector<2x256xf32>
    %c10 = arith.constant 10 : index
    %306 = memref.load %arg6[%c10] : memref<98xf32, #tpu.memory_space<smem>>
    %c59 = arith.constant 59 : index
    %307 = memref.load %arg6[%c59] : memref<98xf32, #tpu.memory_space<smem>>
    %c0_108 = arith.constant 0 : index
    %c96 = arith.constant 96 : index
    %308 = vector.load %arg9[%c0_108, %c96] : memref<2x512xf32, #tpu.memory_space<vmem>>, vector<2x256xf32>
    %309 = vector.broadcast %306 : f32 to vector<2x256xf32>
    %310 = arith.mulf %309, %308 : vector<2x256xf32>
    %c0_109 = arith.constant 0 : index
    %c96_110 = arith.constant 96 : index
    %311 = vector.load %arg10[%c0_109, %c96_110] : memref<2x512xf32, #tpu.memory_space<vmem>>, vector<2x256xf32>
    %312 = vector.broadcast %307 : f32 to vector<2x256xf32>
    %313 = arith.mulf %312, %311 : vector<2x256xf32>
    %314 = arith.addf %310, %313 : vector<2x256xf32>
    %c17 = arith.constant 17 : index
    %315 = memref.load %arg6[%c17] : memref<98xf32, #tpu.memory_space<smem>>
    %c66 = arith.constant 66 : index
    %316 = memref.load %arg6[%c66] : memref<98xf32, #tpu.memory_space<smem>>
    %c0_111 = arith.constant 0 : index
    %c112 = arith.constant 112 : index
    %317 = vector.load %arg9[%c0_111, %c112] : memref<2x512xf32, #tpu.memory_space<vmem>>, vector<2x256xf32>
    %318 = vector.broadcast %315 : f32 to vector<2x256xf32>
    %319 = arith.mulf %318, %317 : vector<2x256xf32>
    %c0_112 = arith.constant 0 : index
    %c112_113 = arith.constant 112 : index
    %320 = vector.load %arg10[%c0_112, %c112_113] : memref<2x512xf32, #tpu.memory_space<vmem>>, vector<2x256xf32>
    %321 = vector.broadcast %316 : f32 to vector<2x256xf32>
    %322 = arith.mulf %321, %320 : vector<2x256xf32>
    %323 = arith.addf %319, %322 : vector<2x256xf32>
    %324 = arith.addf %305, %323 : vector<2x256xf32>
    %c24 = arith.constant 24 : index
    %325 = memref.load %arg6[%c24] : memref<98xf32, #tpu.memory_space<smem>>
    %c73 = arith.constant 73 : index
    %326 = memref.load %arg6[%c73] : memref<98xf32, #tpu.memory_space<smem>>
    %c0_114 = arith.constant 0 : index
    %c128_115 = arith.constant 128 : index
    %327 = vector.load %arg9[%c0_114, %c128_115] : memref<2x512xf32, #tpu.memory_space<vmem>>, vector<2x256xf32>
    %328 = vector.broadcast %325 : f32 to vector<2x256xf32>
    %329 = arith.mulf %328, %327 : vector<2x256xf32>
    %c0_116 = arith.constant 0 : index
    %c128_117 = arith.constant 128 : index
    %330 = vector.load %arg10[%c0_116, %c128_117] : memref<2x512xf32, #tpu.memory_space<vmem>>, vector<2x256xf32>
    %331 = vector.broadcast %326 : f32 to vector<2x256xf32>
    %332 = arith.mulf %331, %330 : vector<2x256xf32>
    %333 = arith.addf %329, %332 : vector<2x256xf32>
    %334 = arith.addf %314, %333 : vector<2x256xf32>
    %c31 = arith.constant 31 : index
    %335 = memref.load %arg6[%c31] : memref<98xf32, #tpu.memory_space<smem>>
    %c80_118 = arith.constant 80 : index
    %336 = memref.load %arg6[%c80_118] : memref<98xf32, #tpu.memory_space<smem>>
    %c0_119 = arith.constant 0 : index
    %c144 = arith.constant 144 : index
    %337 = vector.load %arg9[%c0_119, %c144] : memref<2x512xf32, #tpu.memory_space<vmem>>, vector<2x256xf32>
    %338 = vector.broadcast %335 : f32 to vector<2x256xf32>
    %339 = arith.mulf %338, %337 : vector<2x256xf32>
    %c0_120 = arith.constant 0 : index
    %c144_121 = arith.constant 144 : index
    %340 = vector.load %arg10[%c0_120, %c144_121] : memref<2x512xf32, #tpu.memory_space<vmem>>, vector<2x256xf32>
    %341 = vector.broadcast %336 : f32 to vector<2x256xf32>
    %342 = arith.mulf %341, %340 : vector<2x256xf32>
    %343 = arith.addf %339, %342 : vector<2x256xf32>
    %344 = arith.addf %324, %343 : vector<2x256xf32>
    %c38 = arith.constant 38 : index
    %345 = memref.load %arg6[%c38] : memref<98xf32, #tpu.memory_space<smem>>
    %c87 = arith.constant 87 : index
    %346 = memref.load %arg6[%c87] : memref<98xf32, #tpu.memory_space<smem>>
    %c0_122 = arith.constant 0 : index
    %c160 = arith.constant 160 : index
    %347 = vector.load %arg9[%c0_122, %c160] : memref<2x512xf32, #tpu.memory_space<vmem>>, vector<2x256xf32>
    %348 = vector.broadcast %345 : f32 to vector<2x256xf32>
    %349 = arith.mulf %348, %347 : vector<2x256xf32>
    %c0_123 = arith.constant 0 : index
    %c160_124 = arith.constant 160 : index
    %350 = vector.load %arg10[%c0_123, %c160_124] : memref<2x512xf32, #tpu.memory_space<vmem>>, vector<2x256xf32>
    %351 = vector.broadcast %346 : f32 to vector<2x256xf32>
    %352 = arith.mulf %351, %350 : vector<2x256xf32>
    %353 = arith.addf %349, %352 : vector<2x256xf32>
    %354 = arith.addf %334, %353 : vector<2x256xf32>
    %c45 = arith.constant 45 : index
    %355 = memref.load %arg6[%c45] : memref<98xf32, #tpu.memory_space<smem>>
    %c94_125 = arith.constant 94 : index
    %356 = memref.load %arg6[%c94_125] : memref<98xf32, #tpu.memory_space<smem>>
    %c0_126 = arith.constant 0 : index
    %c176 = arith.constant 176 : index
    %357 = vector.load %arg9[%c0_126, %c176] : memref<2x512xf32, #tpu.memory_space<vmem>>, vector<2x256xf32>
    %358 = vector.broadcast %355 : f32 to vector<2x256xf32>
    %359 = arith.mulf %358, %357 : vector<2x256xf32>
    %c0_127 = arith.constant 0 : index
    %c176_128 = arith.constant 176 : index
    %360 = vector.load %arg10[%c0_127, %c176_128] : memref<2x512xf32, #tpu.memory_space<vmem>>, vector<2x256xf32>
    %361 = vector.broadcast %356 : f32 to vector<2x256xf32>
    %362 = arith.mulf %361, %360 : vector<2x256xf32>
    %363 = arith.addf %359, %362 : vector<2x256xf32>
    %364 = arith.addf %344, %363 : vector<2x256xf32>
    %365 = arith.addf %364, %354 : vector<2x256xf32>
    %366 = arith.addf %296, %365 : vector<2x256xf32>
    %c4 = arith.constant 4 : index
    %367 = memref.load %arg6[%c4] : memref<98xf32, #tpu.memory_space<smem>>
    %c53 = arith.constant 53 : index
    %368 = memref.load %arg6[%c53] : memref<98xf32, #tpu.memory_space<smem>>
    %c0_129 = arith.constant 0 : index
    %c81 = arith.constant 81 : index
    %369 = vector.load %arg9[%c0_129, %c81] : memref<2x512xf32, #tpu.memory_space<vmem>>, vector<2x256xf32>
    %370 = vector.broadcast %367 : f32 to vector<2x256xf32>
    %371 = arith.mulf %370, %369 : vector<2x256xf32>
    %c0_130 = arith.constant 0 : index
    %c81_131 = arith.constant 81 : index
    %372 = vector.load %arg10[%c0_130, %c81_131] : memref<2x512xf32, #tpu.memory_space<vmem>>, vector<2x256xf32>
    %373 = vector.broadcast %368 : f32 to vector<2x256xf32>
    %374 = arith.mulf %373, %372 : vector<2x256xf32>
    %375 = arith.addf %371, %374 : vector<2x256xf32>
    %c11 = arith.constant 11 : index
    %376 = memref.load %arg6[%c11] : memref<98xf32, #tpu.memory_space<smem>>
    %c60 = arith.constant 60 : index
    %377 = memref.load %arg6[%c60] : memref<98xf32, #tpu.memory_space<smem>>
    %c0_132 = arith.constant 0 : index
    %c97 = arith.constant 97 : index
    %378 = vector.load %arg9[%c0_132, %c97] : memref<2x512xf32, #tpu.memory_space<vmem>>, vector<2x256xf32>
    %379 = vector.broadcast %376 : f32 to vector<2x256xf32>
    %380 = arith.mulf %379, %378 : vector<2x256xf32>
    %c0_133 = arith.constant 0 : index
    %c97_134 = arith.constant 97 : index
    %381 = vector.load %arg10[%c0_133, %c97_134] : memref<2x512xf32, #tpu.memory_space<vmem>>, vector<2x256xf32>
    %382 = vector.broadcast %377 : f32 to vector<2x256xf32>
    %383 = arith.mulf %382, %381 : vector<2x256xf32>
    %384 = arith.addf %380, %383 : vector<2x256xf32>
    %c18 = arith.constant 18 : index
    %385 = memref.load %arg6[%c18] : memref<98xf32, #tpu.memory_space<smem>>
    %c67 = arith.constant 67 : index
    %386 = memref.load %arg6[%c67] : memref<98xf32, #tpu.memory_space<smem>>
    %c0_135 = arith.constant 0 : index
    %c113 = arith.constant 113 : index
    %387 = vector.load %arg9[%c0_135, %c113] : memref<2x512xf32, #tpu.memory_space<vmem>>, vector<2x256xf32>
    %388 = vector.broadcast %385 : f32 to vector<2x256xf32>
    %389 = arith.mulf %388, %387 : vector<2x256xf32>
    %c0_136 = arith.constant 0 : index
    %c113_137 = arith.constant 113 : index
    %390 = vector.load %arg10[%c0_136, %c113_137] : memref<2x512xf32, #tpu.memory_space<vmem>>, vector<2x256xf32>
    %391 = vector.broadcast %386 : f32 to vector<2x256xf32>
    %392 = arith.mulf %391, %390 : vector<2x256xf32>
    %393 = arith.addf %389, %392 : vector<2x256xf32>
    %394 = arith.addf %375, %393 : vector<2x256xf32>
    %c25 = arith.constant 25 : index
    %395 = memref.load %arg6[%c25] : memref<98xf32, #tpu.memory_space<smem>>
    %c74 = arith.constant 74 : index
    %396 = memref.load %arg6[%c74] : memref<98xf32, #tpu.memory_space<smem>>
    %c0_138 = arith.constant 0 : index
    %c129 = arith.constant 129 : index
    %397 = vector.load %arg9[%c0_138, %c129] : memref<2x512xf32, #tpu.memory_space<vmem>>, vector<2x256xf32>
    %398 = vector.broadcast %395 : f32 to vector<2x256xf32>
    %399 = arith.mulf %398, %397 : vector<2x256xf32>
    %c0_139 = arith.constant 0 : index
    %c129_140 = arith.constant 129 : index
    %400 = vector.load %arg10[%c0_139, %c129_140] : memref<2x512xf32, #tpu.memory_space<vmem>>, vector<2x256xf32>
    %401 = vector.broadcast %396 : f32 to vector<2x256xf32>
    %402 = arith.mulf %401, %400 : vector<2x256xf32>
    %403 = arith.addf %399, %402 : vector<2x256xf32>
    %404 = arith.addf %384, %403 : vector<2x256xf32>
    %c32 = arith.constant 32 : index
    %405 = memref.load %arg6[%c32] : memref<98xf32, #tpu.memory_space<smem>>
    %c81_141 = arith.constant 81 : index
    %406 = memref.load %arg6[%c81_141] : memref<98xf32, #tpu.memory_space<smem>>
    %c0_142 = arith.constant 0 : index
    %c145 = arith.constant 145 : index
    %407 = vector.load %arg9[%c0_142, %c145] : memref<2x512xf32, #tpu.memory_space<vmem>>, vector<2x256xf32>
    %408 = vector.broadcast %405 : f32 to vector<2x256xf32>
    %409 = arith.mulf %408, %407 : vector<2x256xf32>
    %c0_143 = arith.constant 0 : index
    %c145_144 = arith.constant 145 : index
    %410 = vector.load %arg10[%c0_143, %c145_144] : memref<2x512xf32, #tpu.memory_space<vmem>>, vector<2x256xf32>
    %411 = vector.broadcast %406 : f32 to vector<2x256xf32>
    %412 = arith.mulf %411, %410 : vector<2x256xf32>
    %413 = arith.addf %409, %412 : vector<2x256xf32>
    %414 = arith.addf %394, %413 : vector<2x256xf32>
    %c39 = arith.constant 39 : index
    %415 = memref.load %arg6[%c39] : memref<98xf32, #tpu.memory_space<smem>>
    %c88 = arith.constant 88 : index
    %416 = memref.load %arg6[%c88] : memref<98xf32, #tpu.memory_space<smem>>
    %c0_145 = arith.constant 0 : index
    %c161 = arith.constant 161 : index
    %417 = vector.load %arg9[%c0_145, %c161] : memref<2x512xf32, #tpu.memory_space<vmem>>, vector<2x256xf32>
    %418 = vector.broadcast %415 : f32 to vector<2x256xf32>
    %419 = arith.mulf %418, %417 : vector<2x256xf32>
    %c0_146 = arith.constant 0 : index
    %c161_147 = arith.constant 161 : index
    %420 = vector.load %arg10[%c0_146, %c161_147] : memref<2x512xf32, #tpu.memory_space<vmem>>, vector<2x256xf32>
    %421 = vector.broadcast %416 : f32 to vector<2x256xf32>
    %422 = arith.mulf %421, %420 : vector<2x256xf32>
    %423 = arith.addf %419, %422 : vector<2x256xf32>
    %424 = arith.addf %404, %423 : vector<2x256xf32>
    %c46 = arith.constant 46 : index
    %425 = memref.load %arg6[%c46] : memref<98xf32, #tpu.memory_space<smem>>
    %c95_148 = arith.constant 95 : index
    %426 = memref.load %arg6[%c95_148] : memref<98xf32, #tpu.memory_space<smem>>
    %c0_149 = arith.constant 0 : index
    %c177 = arith.constant 177 : index
    %427 = vector.load %arg9[%c0_149, %c177] : memref<2x512xf32, #tpu.memory_space<vmem>>, vector<2x256xf32>
    %428 = vector.broadcast %425 : f32 to vector<2x256xf32>
    %429 = arith.mulf %428, %427 : vector<2x256xf32>
    %c0_150 = arith.constant 0 : index
    %c177_151 = arith.constant 177 : index
    %430 = vector.load %arg10[%c0_150, %c177_151] : memref<2x512xf32, #tpu.memory_space<vmem>>, vector<2x256xf32>
    %431 = vector.broadcast %426 : f32 to vector<2x256xf32>
    %432 = arith.mulf %431, %430 : vector<2x256xf32>
    %433 = arith.addf %429, %432 : vector<2x256xf32>
    %434 = arith.addf %414, %433 : vector<2x256xf32>
    %435 = arith.addf %434, %424 : vector<2x256xf32>
    %c-1_i32 = arith.constant -1 : i32
    %436 = vector.broadcast %c-1_i32 : i32 to vector<1x256xi32>
    %437 = arith.cmpi sge, %60, %436 : vector<1x256xi32>
    %c15_i32 = arith.constant 15 : i32
    %438 = vector.broadcast %c15_i32 : i32 to vector<1x256xi32>
    %439 = arith.cmpi slt, %60, %438 : vector<1x256xi32>
    %440 = arith.andi %437, %439 : vector<1x256xi1>
    %441 = arith.extui %440 : vector<1x256xi1> to vector<1x256xi32>
    %442 = arith.sitofp %441 : vector<1x256xi32> to vector<1x256xf32>
    %443 = vector.broadcast %442 : vector<1x256xf32> to vector<2x256xf32>
    %444 = arith.mulf %435, %443 : vector<2x256xf32>
    %445 = arith.addf %366, %444 : vector<2x256xf32>
    %c5 = arith.constant 5 : index
    %446 = memref.load %arg6[%c5] : memref<98xf32, #tpu.memory_space<smem>>
    %c54 = arith.constant 54 : index
    %447 = memref.load %arg6[%c54] : memref<98xf32, #tpu.memory_space<smem>>
    %c0_152 = arith.constant 0 : index
    %c82 = arith.constant 82 : index
    %448 = vector.load %arg9[%c0_152, %c82] : memref<2x512xf32, #tpu.memory_space<vmem>>, vector<2x256xf32>
    %449 = vector.broadcast %446 : f32 to vector<2x256xf32>
    %450 = arith.mulf %449, %448 : vector<2x256xf32>
    %c0_153 = arith.constant 0 : index
    %c82_154 = arith.constant 82 : index
    %451 = vector.load %arg10[%c0_153, %c82_154] : memref<2x512xf32, #tpu.memory_space<vmem>>, vector<2x256xf32>
    %452 = vector.broadcast %447 : f32 to vector<2x256xf32>
    %453 = arith.mulf %452, %451 : vector<2x256xf32>
    %454 = arith.addf %450, %453 : vector<2x256xf32>
    %c12 = arith.constant 12 : index
    %455 = memref.load %arg6[%c12] : memref<98xf32, #tpu.memory_space<smem>>
    %c61 = arith.constant 61 : index
    %456 = memref.load %arg6[%c61] : memref<98xf32, #tpu.memory_space<smem>>
    %c0_155 = arith.constant 0 : index
    %c98 = arith.constant 98 : index
    %457 = vector.load %arg9[%c0_155, %c98] : memref<2x512xf32, #tpu.memory_space<vmem>>, vector<2x256xf32>
    %458 = vector.broadcast %455 : f32 to vector<2x256xf32>
    %459 = arith.mulf %458, %457 : vector<2x256xf32>
    %c0_156 = arith.constant 0 : index
    %c98_157 = arith.constant 98 : index
    %460 = vector.load %arg10[%c0_156, %c98_157] : memref<2x512xf32, #tpu.memory_space<vmem>>, vector<2x256xf32>
    %461 = vector.broadcast %456 : f32 to vector<2x256xf32>
    %462 = arith.mulf %461, %460 : vector<2x256xf32>
    %463 = arith.addf %459, %462 : vector<2x256xf32>
    %c19 = arith.constant 19 : index
    %464 = memref.load %arg6[%c19] : memref<98xf32, #tpu.memory_space<smem>>
    %c68 = arith.constant 68 : index
    %465 = memref.load %arg6[%c68] : memref<98xf32, #tpu.memory_space<smem>>
    %c0_158 = arith.constant 0 : index
    %c114 = arith.constant 114 : index
    %466 = vector.load %arg9[%c0_158, %c114] : memref<2x512xf32, #tpu.memory_space<vmem>>, vector<2x256xf32>
    %467 = vector.broadcast %464 : f32 to vector<2x256xf32>
    %468 = arith.mulf %467, %466 : vector<2x256xf32>
    %c0_159 = arith.constant 0 : index
    %c114_160 = arith.constant 114 : index
    %469 = vector.load %arg10[%c0_159, %c114_160] : memref<2x512xf32, #tpu.memory_space<vmem>>, vector<2x256xf32>
    %470 = vector.broadcast %465 : f32 to vector<2x256xf32>
    %471 = arith.mulf %470, %469 : vector<2x256xf32>
    %472 = arith.addf %468, %471 : vector<2x256xf32>
    %473 = arith.addf %454, %472 : vector<2x256xf32>
    %c26 = arith.constant 26 : index
    %474 = memref.load %arg6[%c26] : memref<98xf32, #tpu.memory_space<smem>>
    %c75 = arith.constant 75 : index
    %475 = memref.load %arg6[%c75] : memref<98xf32, #tpu.memory_space<smem>>
    %c0_161 = arith.constant 0 : index
    %c130 = arith.constant 130 : index
    %476 = vector.load %arg9[%c0_161, %c130] : memref<2x512xf32, #tpu.memory_space<vmem>>, vector<2x256xf32>
    %477 = vector.broadcast %474 : f32 to vector<2x256xf32>
    %478 = arith.mulf %477, %476 : vector<2x256xf32>
    %c0_162 = arith.constant 0 : index
    %c130_163 = arith.constant 130 : index
    %479 = vector.load %arg10[%c0_162, %c130_163] : memref<2x512xf32, #tpu.memory_space<vmem>>, vector<2x256xf32>
    %480 = vector.broadcast %475 : f32 to vector<2x256xf32>
    %481 = arith.mulf %480, %479 : vector<2x256xf32>
    %482 = arith.addf %478, %481 : vector<2x256xf32>
    %483 = arith.addf %463, %482 : vector<2x256xf32>
    %c33 = arith.constant 33 : index
    %484 = memref.load %arg6[%c33] : memref<98xf32, #tpu.memory_space<smem>>
    %c82_164 = arith.constant 82 : index
    %485 = memref.load %arg6[%c82_164] : memref<98xf32, #tpu.memory_space<smem>>
    %c0_165 = arith.constant 0 : index
    %c146 = arith.constant 146 : index
    %486 = vector.load %arg9[%c0_165, %c146] : memref<2x512xf32, #tpu.memory_space<vmem>>, vector<2x256xf32>
    %487 = vector.broadcast %484 : f32 to vector<2x256xf32>
    %488 = arith.mulf %487, %486 : vector<2x256xf32>
    %c0_166 = arith.constant 0 : index
    %c146_167 = arith.constant 146 : index
    %489 = vector.load %arg10[%c0_166, %c146_167] : memref<2x512xf32, #tpu.memory_space<vmem>>, vector<2x256xf32>
    %490 = vector.broadcast %485 : f32 to vector<2x256xf32>
    %491 = arith.mulf %490, %489 : vector<2x256xf32>
    %492 = arith.addf %488, %491 : vector<2x256xf32>
    %493 = arith.addf %473, %492 : vector<2x256xf32>
    %c40 = arith.constant 40 : index
    %494 = memref.load %arg6[%c40] : memref<98xf32, #tpu.memory_space<smem>>
    %c89 = arith.constant 89 : index
    %495 = memref.load %arg6[%c89] : memref<98xf32, #tpu.memory_space<smem>>
    %c0_168 = arith.constant 0 : index
    %c162 = arith.constant 162 : index
    %496 = vector.load %arg9[%c0_168, %c162] : memref<2x512xf32, #tpu.memory_space<vmem>>, vector<2x256xf32>
    %497 = vector.broadcast %494 : f32 to vector<2x256xf32>
    %498 = arith.mulf %497, %496 : vector<2x256xf32>
    %c0_169 = arith.constant 0 : index
    %c162_170 = arith.constant 162 : index
    %499 = vector.load %arg10[%c0_169, %c162_170] : memref<2x512xf32, #tpu.memory_space<vmem>>, vector<2x256xf32>
    %500 = vector.broadcast %495 : f32 to vector<2x256xf32>
    %501 = arith.mulf %500, %499 : vector<2x256xf32>
    %502 = arith.addf %498, %501 : vector<2x256xf32>
    %503 = arith.addf %483, %502 : vector<2x256xf32>
    %c47 = arith.constant 47 : index
    %504 = memref.load %arg6[%c47] : memref<98xf32, #tpu.memory_space<smem>>
    %c96_171 = arith.constant 96 : index
    %505 = memref.load %arg6[%c96_171] : memref<98xf32, #tpu.memory_space<smem>>
    %c0_172 = arith.constant 0 : index
    %c178 = arith.constant 178 : index
    %506 = vector.load %arg9[%c0_172, %c178] : memref<2x512xf32, #tpu.memory_space<vmem>>, vector<2x256xf32>
    %507 = vector.broadcast %504 : f32 to vector<2x256xf32>
    %508 = arith.mulf %507, %506 : vector<2x256xf32>
    %c0_173 = arith.constant 0 : index
    %c178_174 = arith.constant 178 : index
    %509 = vector.load %arg10[%c0_173, %c178_174] : memref<2x512xf32, #tpu.memory_space<vmem>>, vector<2x256xf32>
    %510 = vector.broadcast %505 : f32 to vector<2x256xf32>
    %511 = arith.mulf %510, %509 : vector<2x256xf32>
    %512 = arith.addf %508, %511 : vector<2x256xf32>
    %513 = arith.addf %493, %512 : vector<2x256xf32>
    %514 = arith.addf %513, %503 : vector<2x256xf32>
    %c-2_i32 = arith.constant -2 : i32
    %515 = vector.broadcast %c-2_i32 : i32 to vector<1x256xi32>
    %516 = arith.cmpi sge, %60, %515 : vector<1x256xi32>
    %c14_i32 = arith.constant 14 : i32
    %517 = vector.broadcast %c14_i32 : i32 to vector<1x256xi32>
    %518 = arith.cmpi slt, %60, %517 : vector<1x256xi32>
    %519 = arith.andi %516, %518 : vector<1x256xi1>
    %520 = arith.extui %519 : vector<1x256xi1> to vector<1x256xi32>
    %521 = arith.sitofp %520 : vector<1x256xi32> to vector<1x256xf32>
    %522 = vector.broadcast %521 : vector<1x256xf32> to vector<2x256xf32>
    %523 = arith.mulf %514, %522 : vector<2x256xf32>
    %524 = arith.addf %445, %523 : vector<2x256xf32>
    %c6 = arith.constant 6 : index
    %525 = memref.load %arg6[%c6] : memref<98xf32, #tpu.memory_space<smem>>
    %c55 = arith.constant 55 : index
    %526 = memref.load %arg6[%c55] : memref<98xf32, #tpu.memory_space<smem>>
    %c0_175 = arith.constant 0 : index
    %c83 = arith.constant 83 : index
    %527 = vector.load %arg9[%c0_175, %c83] : memref<2x512xf32, #tpu.memory_space<vmem>>, vector<2x256xf32>
    %528 = vector.broadcast %525 : f32 to vector<2x256xf32>
    %529 = arith.mulf %528, %527 : vector<2x256xf32>
    %c0_176 = arith.constant 0 : index
    %c83_177 = arith.constant 83 : index
    %530 = vector.load %arg10[%c0_176, %c83_177] : memref<2x512xf32, #tpu.memory_space<vmem>>, vector<2x256xf32>
    %531 = vector.broadcast %526 : f32 to vector<2x256xf32>
    %532 = arith.mulf %531, %530 : vector<2x256xf32>
    %533 = arith.addf %529, %532 : vector<2x256xf32>
    %c13 = arith.constant 13 : index
    %534 = memref.load %arg6[%c13] : memref<98xf32, #tpu.memory_space<smem>>
    %c62 = arith.constant 62 : index
    %535 = memref.load %arg6[%c62] : memref<98xf32, #tpu.memory_space<smem>>
    %c0_178 = arith.constant 0 : index
    %c99 = arith.constant 99 : index
    %536 = vector.load %arg9[%c0_178, %c99] : memref<2x512xf32, #tpu.memory_space<vmem>>, vector<2x256xf32>
    %537 = vector.broadcast %534 : f32 to vector<2x256xf32>
    %538 = arith.mulf %537, %536 : vector<2x256xf32>
    %c0_179 = arith.constant 0 : index
    %c99_180 = arith.constant 99 : index
    %539 = vector.load %arg10[%c0_179, %c99_180] : memref<2x512xf32, #tpu.memory_space<vmem>>, vector<2x256xf32>
    %540 = vector.broadcast %535 : f32 to vector<2x256xf32>
    %541 = arith.mulf %540, %539 : vector<2x256xf32>
    %542 = arith.addf %538, %541 : vector<2x256xf32>
    %c20 = arith.constant 20 : index
    %543 = memref.load %arg6[%c20] : memref<98xf32, #tpu.memory_space<smem>>
    %c69 = arith.constant 69 : index
    %544 = memref.load %arg6[%c69] : memref<98xf32, #tpu.memory_space<smem>>
    %c0_181 = arith.constant 0 : index
    %c115 = arith.constant 115 : index
    %545 = vector.load %arg9[%c0_181, %c115] : memref<2x512xf32, #tpu.memory_space<vmem>>, vector<2x256xf32>
    %546 = vector.broadcast %543 : f32 to vector<2x256xf32>
    %547 = arith.mulf %546, %545 : vector<2x256xf32>
    %c0_182 = arith.constant 0 : index
    %c115_183 = arith.constant 115 : index
    %548 = vector.load %arg10[%c0_182, %c115_183] : memref<2x512xf32, #tpu.memory_space<vmem>>, vector<2x256xf32>
    %549 = vector.broadcast %544 : f32 to vector<2x256xf32>
    %550 = arith.mulf %549, %548 : vector<2x256xf32>
    %551 = arith.addf %547, %550 : vector<2x256xf32>
    %552 = arith.addf %533, %551 : vector<2x256xf32>
    %c27 = arith.constant 27 : index
    %553 = memref.load %arg6[%c27] : memref<98xf32, #tpu.memory_space<smem>>
    %c76 = arith.constant 76 : index
    %554 = memref.load %arg6[%c76] : memref<98xf32, #tpu.memory_space<smem>>
    %c0_184 = arith.constant 0 : index
    %c131 = arith.constant 131 : index
    %555 = vector.load %arg9[%c0_184, %c131] : memref<2x512xf32, #tpu.memory_space<vmem>>, vector<2x256xf32>
    %556 = vector.broadcast %553 : f32 to vector<2x256xf32>
    %557 = arith.mulf %556, %555 : vector<2x256xf32>
    %c0_185 = arith.constant 0 : index
    %c131_186 = arith.constant 131 : index
    %558 = vector.load %arg10[%c0_185, %c131_186] : memref<2x512xf32, #tpu.memory_space<vmem>>, vector<2x256xf32>
    %559 = vector.broadcast %554 : f32 to vector<2x256xf32>
    %560 = arith.mulf %559, %558 : vector<2x256xf32>
    %561 = arith.addf %557, %560 : vector<2x256xf32>
    %562 = arith.addf %542, %561 : vector<2x256xf32>
    %c34 = arith.constant 34 : index
    %563 = memref.load %arg6[%c34] : memref<98xf32, #tpu.memory_space<smem>>
    %c83_187 = arith.constant 83 : index
    %564 = memref.load %arg6[%c83_187] : memref<98xf32, #tpu.memory_space<smem>>
    %c0_188 = arith.constant 0 : index
    %c147 = arith.constant 147 : index
    %565 = vector.load %arg9[%c0_188, %c147] : memref<2x512xf32, #tpu.memory_space<vmem>>, vector<2x256xf32>
    %566 = vector.broadcast %563 : f32 to vector<2x256xf32>
    %567 = arith.mulf %566, %565 : vector<2x256xf32>
    %c0_189 = arith.constant 0 : index
    %c147_190 = arith.constant 147 : index
    %568 = vector.load %arg10[%c0_189, %c147_190] : memref<2x512xf32, #tpu.memory_space<vmem>>, vector<2x256xf32>
    %569 = vector.broadcast %564 : f32 to vector<2x256xf32>
    %570 = arith.mulf %569, %568 : vector<2x256xf32>
    %571 = arith.addf %567, %570 : vector<2x256xf32>
    %572 = arith.addf %552, %571 : vector<2x256xf32>
    %c41 = arith.constant 41 : index
    %573 = memref.load %arg6[%c41] : memref<98xf32, #tpu.memory_space<smem>>
    %c90 = arith.constant 90 : index
    %574 = memref.load %arg6[%c90] : memref<98xf32, #tpu.memory_space<smem>>
    %c0_191 = arith.constant 0 : index
    %c163 = arith.constant 163 : index
    %575 = vector.load %arg9[%c0_191, %c163] : memref<2x512xf32, #tpu.memory_space<vmem>>, vector<2x256xf32>
    %576 = vector.broadcast %573 : f32 to vector<2x256xf32>
    %577 = arith.mulf %576, %575 : vector<2x256xf32>
    %c0_192 = arith.constant 0 : index
    %c163_193 = arith.constant 163 : index
    %578 = vector.load %arg10[%c0_192, %c163_193] : memref<2x512xf32, #tpu.memory_space<vmem>>, vector<2x256xf32>
    %579 = vector.broadcast %574 : f32 to vector<2x256xf32>
    %580 = arith.mulf %579, %578 : vector<2x256xf32>
    %581 = arith.addf %577, %580 : vector<2x256xf32>
    %582 = arith.addf %562, %581 : vector<2x256xf32>
    %c48 = arith.constant 48 : index
    %583 = memref.load %arg6[%c48] : memref<98xf32, #tpu.memory_space<smem>>
    %c97_194 = arith.constant 97 : index
    %584 = memref.load %arg6[%c97_194] : memref<98xf32, #tpu.memory_space<smem>>
    %c0_195 = arith.constant 0 : index
    %c179 = arith.constant 179 : index
    %585 = vector.load %arg9[%c0_195, %c179] : memref<2x512xf32, #tpu.memory_space<vmem>>, vector<2x256xf32>
    %586 = vector.broadcast %583 : f32 to vector<2x256xf32>
    %587 = arith.mulf %586, %585 : vector<2x256xf32>
    %c0_196 = arith.constant 0 : index
    %c179_197 = arith.constant 179 : index
    %588 = vector.load %arg10[%c0_196, %c179_197] : memref<2x512xf32, #tpu.memory_space<vmem>>, vector<2x256xf32>
    %589 = vector.broadcast %584 : f32 to vector<2x256xf32>
    %590 = arith.mulf %589, %588 : vector<2x256xf32>
    %591 = arith.addf %587, %590 : vector<2x256xf32>
    %592 = arith.addf %572, %591 : vector<2x256xf32>
    %593 = arith.addf %592, %582 : vector<2x256xf32>
    %c-3_i32 = arith.constant -3 : i32
    %594 = vector.broadcast %c-3_i32 : i32 to vector<1x256xi32>
    %595 = arith.cmpi sge, %60, %594 : vector<1x256xi32>
    %c13_i32 = arith.constant 13 : i32
    %596 = vector.broadcast %c13_i32 : i32 to vector<1x256xi32>
    %597 = arith.cmpi slt, %60, %596 : vector<1x256xi32>
    %598 = arith.andi %595, %597 : vector<1x256xi1>
    %599 = arith.extui %598 : vector<1x256xi1> to vector<1x256xi32>
    %600 = arith.sitofp %599 : vector<1x256xi32> to vector<1x256xf32>
    %601 = vector.broadcast %600 : vector<1x256xf32> to vector<2x256xf32>
    %602 = arith.mulf %593, %601 : vector<2x256xf32>
    %603 = arith.addf %524, %602 : vector<2x256xf32>
    %c0_198 = arith.constant 0 : index
    %604 = memref.load %arg7[%c0_198] : memref<1xf32, #tpu.memory_space<smem>>
    %605 = vector.broadcast %604 : f32 to vector<2x256xf32>
    %606 = arith.addf %603, %605 : vector<2x256xf32>
    %607 = arith.negf %606 : vector<2x256xf32>
    %608 = math.exp %607 : vector<2x256xf32>
    %cst_199 = arith.constant 1.000000e+00 : f32
    %609 = vector.broadcast %cst_199 : f32 to vector<2x256xf32>
    %610 = arith.addf %609, %608 : vector<2x256xf32>
    %611 = arith.divf %609, %610 : vector<2x256xf32>
    %612 = vector.shape_cast %611 : vector<2x256xf32> to vector<2x1x256xf32>
    %613 = vector.broadcast %612 : vector<2x1x256xf32> to vector<2x32x256xf32>
    %614 = arith.mulf %32, %613 : vector<2x32x256xf32>
    %c0_200 = arith.constant 0 : index
    %c0_201 = arith.constant 0 : index
    %c0_202 = arith.constant 0 : index
    %615 = vector.load %arg8[%c0_200, %c0_201, %c0_202] : memref<2x32x256xf32, #tpu.memory_space<vmem>>, vector<2x32x256xf32>
    tpu.vector_store %arg8[%c0_200, %c0_201, %c0_202], %614 {strides = array<i32>} : memref<2x32x256xf32, #tpu.memory_space<vmem>>, vector<2x32x256xf32>,
    return
  }
  func.func @transform_0(%arg0: i32) -> (i32, i32, i32) {
    %c0_i32 = arith.constant 0 : i32
    %c0_i32_0 = arith.constant 0 : i32
    %c0_i32_1 = arith.constant 0 : i32
    return %arg0, %c0_i32, %c0_i32_0 : i32, i32, i32
  }
  func.func @transform_1(%arg0: i32) -> (i32, i32) {
    %c0_i32 = arith.constant 0 : i32
    %c0_i32_0 = arith.constant 0 : i32
    %c0_i32_1 = arith.constant 0 : i32
    return %c0_i32, %c0_i32_0 : i32, i32
  }
  func.func @transform_2(%arg0: i32) -> (i32, i32) {
    %c0_i32 = arith.constant 0 : i32
    %c0_i32_0 = arith.constant 0 : i32
    %c0_i32_1 = arith.constant 0 : i32
    return %c0_i32, %c0_i32_0 : i32, i32
  }
  func.func @transform_3(%arg0: i32) -> (i32, i32) {
    %c0_i32 = arith.constant 0 : i32
    %c0_i32_0 = arith.constant 0 : i32
    %c0_i32_1 = arith.constant 0 : i32
    return %c0_i32, %c0_i32_0 : i32, i32
  }
  func.func @transform_4(%arg0: i32) -> (i32, i32) {
    %c0_i32 = arith.constant 0 : i32
    %c0_i32_0 = arith.constant 0 : i32
    %c0_i32_1 = arith.constant 0 : i32
    return %c0_i32, %c0_i32_0 : i32, i32
  }
  func.func @transform_5(%arg0: i32) -> i32 {
    %c0_i32 = arith.constant 0 : i32
    %c0_i32_0 = arith.constant 0 : i32
    return %c0_i32 : i32
  }
  func.func @transform_6(%arg0: i32) -> i32 {
    %c0_i32 = arith.constant 0 : i32
    %c0_i32_0 = arith.constant 0 : i32
    return %c0_i32 : i32
  }
  func.func @transform_7(%arg0: i32) -> (i32, i32, i32) {
    %c0_i32 = arith.constant 0 : i32
    %c0_i32_0 = arith.constant 0 : i32
    %c0_i32_1 = arith.constant 0 : i32
    return %arg0, %c0_i32, %c0_i32_0 : i32, i32, i32
  }
}

</mosaic_0001>

<bundles_post_ra>
// kernel: tpu_custom_call.1
= control target key start
LH: loop header
LB: loop body
LE: loop exit
PB: predicated region body
PF: predicated region fallthrough
CT: control target
= control target key end

     0   :  { %s2779_s0 = inlined_call_operand.hbm [shape: f32[2,32,256], index: 0, kind: input, shape index: {}]   ;;  %s2780_s1 = inlined_call_operand.vmem [shape: f32[32,2], index: 1, kind: input, shape index: {}]   ;;  %s2781_s2 = inlined_call_operand.vmem [shape: f32[2,32], index: 2, kind: input, shape index: {}]   ;;  %s2782_s3 = inlined_call_operand.vmem [shape: f32[1,2], index: 3, kind: input, shape index: {}]   ;;  %s2783_s4 = inlined_call_operand.vmem [shape: f32[1,32], index: 4, kind: input, shape index: {}]   ;;  %s2784_s5 = inlined_call_operand.vmem [shape: f32[98], index: 5, kind: input, shape index: {}]   ;;  %s2785_s6 = inlined_call_operand.<no memory space> [shape: f32[1], index: 6, kind: input, shape index: {}]   ;;  %s2786_s7 = inlined_call_operand.hbm [shape: f32[2,32,256], index: 7, kind: output, shape index: {}]  }
   0x1   :  { %2843 = sst [smem:[#allocation60_spill]] %s2785_s6 }
   0x2   :  { %2844 = sst [smem:[#allocation61_spill]] %s2786_s7 }
   0x3   :  { %13 = vsyncpa [#allocation6], 0 }
   0x4   :  { %14 = vsyncpa [#allocation8], 0 }
   0x5   :  { %15 = vsyncpa [#allocation7], 0  ;;  %s20_s26 = sshll.u32 %s2779_s0, 4  ;;  %s1671_s27 = smov [#allocation5]   ;;  %s21_s26 = int_to_ptr.hbm [resolvable:$true] %s20_s26 }
   0x6   :  { %s22_s28 = sshll.u32 %s1671_s27, 4  ;;  %s42_s8 = sshll.u32 %s2784_s5, 4  ;;  %s23_s28 = int_to_ptr.vmem [resolvable:$true] %s22_s28  ;;  %s43_s8 = int_to_ptr.vmem [resolvable:$true] %s42_s8 }
   0x7   :  { %s2787_s9 = smov 256   ;;  %s2788_s10 = smov 16  }
   0x8   :  { %28 = dma.hbm_to_vmem [thread:$0]  %s21_s26, 2048, %s23_s28, [#allocation6], %s2787_s9, %s2787_s9, %s2788_s10  }
   0x9   :  { %s1674_s11 = smov [#allocation9]  }
   0xa   :  { %45 = dma.vmem_to_smem %s43_s8, 16, %s1674_s11, [#allocation8]  }
   0xb   :  { %1665 = dma.done.wait [#allocation6], 2048  }
   0xc   :  { %1666 = vsyncadd [#allocation6], 4294965248 }
   0xd   :  { %1667 = dma.done.wait [#allocation8], 16  }
   0xe   :  { %1668 = vsyncadd [#allocation8], 4294967280 }
   0xf   :  { %56 = sfence }
  0x10   :  { %v1744_v0 = vld [vmem:[#allocation5 + $0x40] sm:$0xff]  ;;  %v1746_v1 = vld [vmem:[#allocation5 + $0x48] sm:$0xff]  ;;  %v1762_v9 = vld [vmem:[#allocation5 + $0x50] sm:$0xff]  ;;  %v145_v39 = vlaneseq  ;;  %vm150_vm0 = vcmask 130112   ;;  %vm154_vm1 = vcmask 195712   ;;  %vm158_vm2 = vcmask 261312  }
  0x11   :  { %v1748_v2 = vld [vmem:[#allocation5] sm:$0xff]  ;;  %v85_v3 = vadd.f32 %v1746_v1, %v1744_v0  ;;  %v1752_v4 = vld [vmem:[#allocation5 + $0x8] sm:$0xff]  ;;  %v1764_v10 = vld [vmem:[#allocation5 + $0x58] sm:$0xff]  ;;  %v117_v25 = vmax.f32 %v1744_v0, %v1746_v1  ;;  %vm167_vm3 = vcmask 1041409   ;;  %vm169_vm4 = vcmask 261120   ;;  %s1864_s22 = sld [smem:[#allocation9 + $0x24]] }
  0x12   :  { %v1754_v5 = vld [vmem:[#allocation5 + $0x20] sm:$0xff]  ;;  %v1756_v6 = vld [vmem:[#allocation5 + $0x28] sm:$0xff]  ;;  %v73_v7 = vadd.f32 %v1752_v4, %v1748_v2  ;;  %v1766_v11 = vld [vmem:[#allocation5 + $0x10] sm:$0xff]  ;;  %v88_v15 = vadd.f32 %v1764_v10, %v1762_v9  ;;  %v105_v24 = vmax.f32 %v1748_v2, %v1752_v4  ;;  %v120_v27 = vmax.f32 %v1762_v9, %v1764_v10  ;;  %s1870_s23 = sld [smem:[#allocation9 + $0x17]]  ;;  %s1677_s17 = smov 79  }
  0x13   :  { %v79_v8 = vadd.f32 %v1756_v6, %v1754_v5  ;;  %86 = vadd.xlane.f32.xlu1 %v85_v3  ;;  %v1768_v12 = vld [vmem:[#allocation5 + $0x18] sm:$0xff]  ;;  %v1770_v13 = vld [vmem:[#allocation5 + $0x60] sm:$0xff]  ;;  %v1772_v14 = vld [vmem:[#allocation5 + $0x68] sm:$0xff]  ;;  %v111_v29 = vmax.f32 %v1754_v5, %v1756_v6  ;;  %v1821_v40 = vand.u32 127, %v145_v39  ;;  %vm250_vm5 = vcmask 1041408   ;;  %s1873_s24 = sld [smem:[#allocation9 + $0x16]] }
  0x14   :  { %74 = vadd.xlane.f32.xlu0 %v73_v7  ;;  %v76_v16 = vadd.f32 %v1768_v12, %v1766_v11  ;;  %v91_v17 = vadd.f32 %v1772_v14, %v1770_v13  ;;  %v1780_v18 = vld [vmem:[#allocation5 + $0x70] sm:$0xff]  ;;  %v1782_v19 = vld [vmem:[#allocation5 + $0x78] sm:$0xff]  ;;  %v108_v26 = vmax.f32 %v1766_v11, %v1768_v12  ;;  %v123_v28 = vmax.f32 %v1770_v13, %v1772_v14  ;;  %v133_v32 = vld [vmem:[%s2780_s1 + $0x18] sm:$0xff]  ;;  %s1879_s25 = sld [smem:[#allocation9 + $0x47]]  ;;  %s1678_s10 = smov 81  }
  0x15   :  { %80 = vadd.xlane.f32.xlu2 %v79_v8  ;;  %v1784_v20 = vld [vmem:[#allocation5 + $0x30] sm:$0xff]  ;;  %v1786_v21 = vld [vmem:[#allocation5 + $0x38] sm:$0xff]  ;;  %v94_v22 = vadd.f32 %v1782_v19, %v1780_v18  ;;  %v126_v31 = vmax.f32 %v1780_v18, %v1782_v19  ;;  %184 = vmatpush.msra.mxu0 %v133_v32  ;;  %v132_v33 = vld [vmem:[%s2780_s1 + $0x10] sm:$0xff]  ;;  %v148_v43 = vadd.s32 4294967288, %v1821_v40  ;;  %v152_v49 = vadd.s32 4294967280, %v1821_v40  ;;  %s1884_s26 = sld [smem:[#allocation9 + $0x18]] }
  0x16   :  { %v82_v23 = vadd.f32 %v1786_v21, %v1784_v20  ;;  %v114_v30 = vmax.f32 %v1784_v20, %v1786_v21  ;;  %230 = vmatpush.msra.mxu1 %v133_v32  ;;  %v131_v34 = vld [vmem:[%s2780_s1 + $0x8] sm:$0xff]  ;;  %v130_v35 = vld [vmem:[%s2780_s1] sm:$0xff]  ;;  %v156_v55 = vadd.s32 4294967272, %v1821_v40  ;;  %vm246_vm6 = vcmask 15360   ;;  %s1888_s27 = sld [smem:[#allocation9 + $0x49]] }
  0x17   :  { %185 = vmatpush.msra.mxu0 %v132_v33  ;;  %vm442_vm11 = vcmask 1042024   ;;  %vm445_vm12 = vcmask 410624   ;;  %s1896_s28 = sld [smem:[#allocation9 + $0x19]] }
  0x18   :  { %231 = vmatpush.msra.mxu1 %v132_v33  ;;  %s1901_s29 = sld [smem:[#allocation9 + $0x4a]] }
  0x19   :  { %186 = vmatpush.msra.mxu0 %v131_v34  ;;  %s1909_s30 = sld [smem:[#allocation9 + $0x25]] }
  0x1a   :  { %232 = vmatpush.msra.mxu1 %v131_v34  ;;  %s1918_s8 = sld [smem:[#allocation9 + $0x56]] }
  0x1b   :  { %89 = vadd.xlane.f32.xlu1 %v88_v15  ;;  %187 = vmatpush.msra.mxu0 %v130_v35  ;;  %2845 = sst [smem:[#allocation14_spill]] %s1884_s26 }
  0x1c   :  { %77 = vadd.xlane.f32.xlu0 %v76_v16  ;;  %233 = vmatpush.msra.mxu1 %v130_v35  ;;  %2846 = sst [smem:[#allocation15_spill]] %s1888_s27 }
  0x1d   :  { %92 = vadd.xlane.f32.xlu2 %v91_v17  ;;  %2847 = sst [smem:[#allocation16_spill]] %s1896_s28 }
  0x1e   :  { %2848 = sst [smem:[#allocation17_spill]] %s1901_s29 }
  0x1f   :  { %2849 = sst [smem:[#allocation18_spill]] %s1909_s30 }
  0x20   :  { %2850 = sst [smem:[#allocation19_spill]] %s1918_s8 }
  0x21   :  { %s1928_s11 = sld [smem:[#allocation9 + $0x27]] }
  0x22   :  { %s1931_s0 = sld [smem:[#allocation9 + $0x58]] }
  0x23   :  { %95 = vadd.xlane.f32.xlu1 %v94_v22  ;;  %s1938_s5 = sld [smem:[#allocation9 + $0x1a]] }
  0x24   :  { %83 = vadd.xlane.f32.xlu0 %v82_v23  ;;  %s1942_s12 = sld [smem:[#allocation9 + $0x4b]] }
  0x25   :  { %106 = vmax.xlane.f32.xlu2 %v105_v24  ;;  %s1945_s13 = sld [smem:[#allocation9 + $0x26]] }
  0x26   :  { %s1951_s14 = sld [smem:[#allocation9 + $0x57]] }
  0x27   :  { %2851 = sst [smem:[#allocation20_spill]] %s1928_s11 }
  0x28   :  { %2852 = sst [smem:[#allocation21_spill]] %s1931_s0 }
  0x29   :  { %2853 = sst [smem:[#allocation22_spill]] %s1938_s5 }
  0x2a   :  { %2854 = sst [smem:[#allocation23_spill]] %s1942_s12 }
  0x2b   :  { %118 = vmax.xlane.f32.xlu1 %v117_v25  ;;  %2855 = sst [smem:[#allocation24_spill]] %s1945_s13 }
  0x2c   :  { %109 = vmax.xlane.f32.xlu0 %v108_v26  ;;  %2856 = sst [smem:[#allocation25_spill]] %s1951_s14 }
  0x2d   :  { %121 = vmax.xlane.f32.xlu2 %v120_v27  ;;  %s1957_s15 = sld [smem:[#allocation9 + $0x1b]] }
  0x2e   :  { %s1968_s16 = sld [smem:[#allocation9 + $0x4c]] }
  0x2f   :  { %s1977_s1 = sld [smem:[#allocation9 + $0x29]] }
  0x30   :  { %s1983_s18 = sld [smem:[#allocation9 + $0x5a]] }
  0x31   :  { %s1989_s19 = sld [smem:[#allocation9 + $0x28]] }
  0x32   :  { %s1996_s20 = sld [smem:[#allocation9 + $0x59]] }
  0x33   :  { %124 = vmax.xlane.f32.xlu1 %v123_v28  ;;  %2857 = sst [smem:[#allocation26_spill]] %s1957_s15 }
  0x34   :  { %112 = vmax.xlane.f32.xlu0 %v111_v29  ;;  %2858 = sst [smem:[#allocation27_spill]] %s1968_s16 }
  0x35   :  { %115 = vmax.xlane.f32.xlu2 %v114_v30  ;;  %s2000_s21 = sld [smem:[#allocation9 + $0x1d]] }
  0x36   :  { %2859 = sst [smem:[#allocation28_spill]] %s1983_s18 }
  0x37   :  { %2860 = sst [smem:[#allocation29_spill]] %s1989_s19 }
  0x38   :  { %2861 = sst [smem:[#allocation30_spill]] %s1996_s20 }
  0x39   :  { %s2019_s9 = sld [smem:[#allocation9 + $0x40]] }
  0x3a   :  { %s2022_s7 = sld [smem:[#allocation9 + $0x15]] }
  0x3b   :  { %s2028_s6 = sld [smem:[#allocation9 + $0x46]] }
  0x3c   :  { %127 = vmax.xlane.f32.xlu0 %v126_v31 }
  0x3f   :  { %2865 = sst [smem:[#allocation34_spill]] %s2019_s9 }
  0x40   :  { %2866 = sst [smem:[#allocation35_spill]] %s2022_s7  ;;  %s1679_s7 = smov 78  }
  0x41   :  { %2867 = sst [smem:[#allocation36_spill]] %s2028_s6 }
  0x42   :  { %s2034_s9 = sld [smem:[#allocation9 + $0x5c]] }
  0x43   :  { %s2038_s6 = sld [smem:[#allocation9 + $0x41]] }
  0x48   :  { %2869 = sst [smem:[#allocation38_spill]] %s2034_s9 }
  0x49   :  { %2871 = sst [smem:[#allocation40_spill]] %s2038_s6 }
  0x4a   :  { %s2049_s6 = sld [smem:[#allocation9 + $0x5e]] }
  0x4b   :  { %s2051_s9 = sld [smem:[#allocation9 + $0x13]] }
  0x50   :  { %2875 = sst [smem:[#allocation44_spill]] %s2049_s6 }
  0x51   :  { %2876 = sst [smem:[#allocation45_spill]] %s2051_s9 }
  0x52   :  { %s2059_s6 = sld [smem:[#allocation9 + $0x14]] }
  0x53   :  { %s2061_s9 = sld [smem:[#allocation9 + $0x45]] }
  0x58   :  { %2880 = sst [smem:[#allocation49_spill]] %s2059_s6 }
  0x59   :  { %2881 = sst [smem:[#allocation50_spill]] %s2061_s9 }
  0x5a   :  { %s2068_s9 = sld [smem:[#allocation9 + $0x2f]] }
  0x60   :  { %2884 = sst [smem:[#allocation53_spill]] %s2068_s9 }
  0x61   :  { %s2085_s9 = sld [smem:[#allocation9 + $0x53]] }
  0x67   :  { %2887 = sst [smem:[#allocation56_spill]] %s2085_s9 }
  0x68   :  { %s2097_s9 = sld [smem:[#allocation9 + $0x61]] }
  0x6e   :  { %2889 = sst [smem:[#allocation58_spill]] %s2097_s9 }
  0x6f   :  { %s2915_s6 = sld [smem:[#allocation58_spill]] }
  0x86   :  { %v87_v36 = vpop.xlane.xlu1 %86 }
  0x87   :  { %v75_v37 = vpop.xlane.xlu0 %74  ;;  %v101_v42 = vmul.f32 0.00390625, %v87_v36 }
  0x88   :  { %v81_v38 = vpop.xlane.xlu2 %80  ;;  %v97_v48 = vmul.f32 0.00390625, %v75_v37 }
  0x89   :  { %v160_v51 = vperm.slane %v101_v42, %v1821_v40  ;;  %v99_v52 = vmul.f32 0.00390625, %v81_v38 }
  0x8a   :  { %v147_v56 = vperm.slane %v97_v48, %v1821_v40 }
  0x8b   :  { %v153_v59 = vperm.slane %v99_v52, %v152_v49 }
  0x8e   :  { %v90_v41 = vpop.xlane.xlu1 %89 }
  0x8f   :  { %v102_v44 = vmul.f32 0.00390625, %v90_v41  ;;  %v78_v45 = vpop.xlane.xlu0 %77 }
  0x90   :  { %v93_v46 = vpop.xlane.xlu2 %92  ;;  %v98_v47 = vmul.f32 0.00390625, %v78_v45 }
  0x91   :  { %v103_v50 = vmul.f32 0.00390625, %v93_v46  ;;  %v161_v53 = vperm.slane %v102_v44, %v148_v43 }
  0x92   :  { %v149_v54 = vperm.slane %v98_v47, %v148_v43 }
  0x93   :  { %v163_v57 = vperm.slane %v103_v50, %v152_v49  ;;  %v162_v60 = vsel %vm150_vm0, %v161_v53, %v160_v51  ;;  %v1594_v50 = vld [vmem:[%s2782_s3] ss:$0 sm:$0xff]  ;;  %s1859_s3 = sld [smem:[#allocation9 + $0x55]] }
  0x94   :  { %v151_v3 = vsel %vm150_vm0, %v149_v54, %v147_v56 }
  0x95   :  { %v164_v16 = vsel %vm154_vm1, %v163_v57, %v162_v60  ;;  %v155_v17 = vsel %vm154_vm1, %v153_v59, %v151_v3  ;;  %v241_v59 = vld [vmem:[%s2783_s4] sm:$0x1]  ;;  %s1861_s4 = sld [smem:[#allocation9 + $0x48]] }
  0x96   :  { %v96_v58 = vpop.xlane.xlu1 %95 }
  0x97   :  { %v104_v61 = vmul.f32 0.00390625, %v96_v58  ;;  %v84_v62 = vpop.xlane.xlu0 %83  ;;  %v295_v58 = vshrl.u32 %v145_v39, 7 }
  0x98   :  { %v107_v63 = vpop.xlane.xlu2 %106  ;;  %v100_v7 = vmul.f32 0.00390625, %v84_v62 }
  0x99   :  { %v165_v8 = vperm.slane %v104_v61, %v156_v55  ;;  %v201_v29 = vperm.slane %v107_v63, %v1821_v40  ;;  %1588 = vset.pattern.permute.xlu0 %v295_v58  ;;  %1586 = vset.pattern.permute.xlu1 %v295_v58  ;;  %v302_v60 = vadd.s32 8, %v295_v58  ;;  %v242_v61 = vmul.f32 2.0, %v241_v59 }
  0x9a   :  { %v157_v15 = vperm.slane %v100_v7, %v156_v55 }
  0x9b   :  { %v166_v22 = vsel %vm158_vm2, %v165_v8, %v164_v16  ;;  %1587 = vset.pattern.permute.xlu2 %v302_v60  ;;  %v244_v62 = vperm.slane %v242_v61, 0 }
  0x9c   :  { %v159_v23 = vsel %vm158_vm2, %v157_v15, %v155_v17 }
  0x9d   :  { %v168_v24 = vsel %vm167_vm3, %v166_v22, %v159_v23 }
  0x9e   :  { %1447 = vmatmul.msk.f32.vlgmr.msra.gmra.mxu0 %vm169_vm4, %v168_v24  ;;  %v119_v26 = vpop.xlane.xlu1 %118 }
  0x9f   :  { %v110_v25 = vpop.xlane.xlu0 %109  ;;  %v208_v30 = vperm.slane %v119_v26, %v1821_v40 }
  0xa0   :  { %v122_v27 = vpop.xlane.xlu2 %121  ;;  %v202_v31 = vperm.slane %v110_v25, %v148_v43 }
  0xa1   :  { %v209_v32 = vperm.slane %v122_v27, %v148_v43 }
  0xa2   :  { %v203_v37 = vsel %vm150_vm0, %v202_v31, %v201_v29  ;;  %v308_v31 = vadd.s32 16, %v295_v58 }
  0xa3   :  { %v210_v38 = vsel %vm150_vm0, %v209_v32, %v208_v30  ;;  %v314_v32 = vadd.s32 24, %v295_v58 }
  0xa6   :  { %v125_v33 = vpop.xlane.xlu1 %124 }
  0xa7   :  { %v113_v28 = vpop.xlane.xlu0 %112  ;;  %v211_v36 = vperm.slane %v125_v33, %v152_v49 }
  0xa8   :  { %v204_v34 = vperm.slane %v113_v28, %v152_v49  ;;  %v116_v35 = vpop.xlane.xlu2 %115  ;;  %v240_v49 = vld [vmem:[%s2781_s2] sm:$0x3]  ;;  %s2005_s2 = sld [smem:[#allocation9 + $0x4e]] }
  0xa9   :  { %v206_v41 = vperm.slane %v116_v35, %v156_v55  ;;  %v212_v46 = vsel %vm154_vm1, %v211_v36, %v210_v38  ;;  %1449 = vmatpush.msk.msra.mxu2 %vm250_vm5, %v240_v49 }
  0xaa   :  { %v205_v42 = vsel %vm154_vm1, %v204_v34, %v203_v37  ;;  %v2833_v37 = vmov 0.0  }
  0xab   :  { %v207_v47 = vsel %vm158_vm2, %v206_v41, %v205_v42  ;;  %443 = vst.msk [vmem:[#allocation2] sm:$0x3] %vm442_vm11, %v2833_v37  ;;  %v1676_v41 = vmov 32.0  }
  0xac   :  { %444 = vst.msk [vmem:[#allocation3] sm:$0x3] %vm442_vm11, %v2833_v37  ;;  %vm571_vm11 = vcmask 523264  }
  0xad   :  { %446 = vst.msk [vmem:[#allocation2 + $0x6] sm:$0x3] %vm445_vm12, %v2833_v37 }
  0xae   :  { %447 = vst.msk [vmem:[#allocation3 + $0x6] sm:$0x3] %vm445_vm12, %v2833_v37  ;;  %2862 = sst [smem:[#allocation31_spill]] %s2005_s2 }
  0xaf   :  { %v128_v44 = vpop.xlane.xlu0 %127 }
  0xb0   :  { %v213_v45 = vperm.slane %v128_v44, %v156_v55 }
  0xb2   :  { %v214_v48 = vsel %vm158_vm2, %v213_v45, %v212_v46  ;;  %v488_v46 = vadd.s32 128, %v1821_v40 }
  0xb3   :  { %v215_v43 = vsel %vm167_vm3, %v214_v48, %v207_v47 }
  0xb4   :  { %1448 = vmatmul.msk.f32.vlgmr.msra.gmra.mxu1 %vm169_vm4, %v215_v43  ;;  %v1907_v49 = vand.u32 15, %v488_v46 }
  0xb6   :  { %vm844_vm13 = vcmp.ge.s32.totalorder %v1907_v49, 1  ;;  %vm1067_vm15 = vcmp.lt.s32.totalorder %v1907_v49, 15  ;;  %vm724_vm1 = vcmp.ge.s32.totalorder %v1907_v49, 2  ;;  %vm1187_vm12 = vcmp.lt.s32.totalorder %v1907_v49, 14 }
 0x11b   :  { %v189_v51 = vpop.f32.mrf.mxu0 }
 0x11c   :  { %v190_v52 = vadd.f32 %v1594_v50, %v189_v51 }
 0x11e   :  { %v192_v55 = vmax.f32 %v190_v52, 0.0 }
 0x131   :  { %v235_v53 = vpop.f32.mrf.mxu1 }
 0x132   :  { %v236_v54 = vadd.f32 %v1594_v50, %v235_v53 }
 0x134   :  { %v238_v56 = vmax.f32 %v236_v54, 0.0  ;;  %v1925_v54 = vand.u32 15, %v1821_v40  ;;  %v1498_v40 = vsel %vm844_vm13, 1.0, %v2833_v37  ;;  %vm1307_vm13 = vcmp.lt.s32.totalorder %v1907_v49, 13 }
 0x136   :  { %v239_v57 = vadd.f32 %v238_v56, %v192_v55  ;;  %vm843_vm14 = vcmp.ge.s32.totalorder %v1925_v54, 1  ;;  %vm1066_vm0 = vcmp.lt.s32.totalorder %v1925_v54, 15  ;;  %vm723_vm2 = vcmp.ge.s32.totalorder %v1925_v54, 2 }
 0x138   :  { %1450 = vmatmul.msk.f32.vlgmr.msra.gmra.mxu2 %vm246_vm6, %v239_v57 }
 0x1bb   :  { %v271_v63 = vpop.f32.mrf.mxu2 }
 0x1bc   :  { %v272_v3 = vadd.f32 %v271_v63, %v244_v62  ;;  %v1497_v62 = vsel %vm843_vm14, 1.0, %v2833_v37  ;;  %v855_v63 = vrot.slane %v1498_v40, 6  ;;  %vm1186_vm14 = vcmp.lt.s32.totalorder %v1925_v54, 14 }
 0x1be   :  { %v1451_v7 = vmul.f32 -1.442695, %v272_v3 }
 0x1c0   :  { %1595 = vpow2.f32 %v1451_v7 }
 0x1c6   :  { %v1596_v8 = vpop.eup %1595 }
 0x1c7   :  { %v277_v15 = vadd.f32 1.0, %v1596_v8 }
 0x1c9   :  { %1597 = vrcp.f32 %v277_v15  ;;  %v289_v22 = vand.u32 2147483648, %v277_v15  ;;  %v287_v24 = vand.u32 2147483647, %v277_v15  ;;  %vm283_vm8 = vweird.f32 %v277_v15 }
 0x1ca   :  { %1599 = vrcp.f32 %v1676_v41 }
 0x1cb   :  { %v290_v26 = vor.u32 1.1754944e-38, %v289_v22  ;;  %vm288_vm10 = vcmp.eq.f32.partialorder %v287_v24, 8.507059e+37 }
 0x1cf   :  { %v1598_v16 = vpop.eup %1597 }
 0x1d0   :  { %v279_v17 = vmul.f32 %v1598_v16, %v277_v15  ;;  %vm284_vm7 = vweird.f32 %v1598_v16  ;;  %v1903_v48 = vpop.eup %1599 }
 0x1d1   :  { %vm285_vm9 = vmor %vm283_vm8, %vm284_vm7  ;;  %vm400_vm6 = vweird.f32 %v1903_v48  ;;  %vm463_vm7 = vcmask 1043459   ;;  %vm465_vm8 = vcmask 1045509  }
 0x1d2   :  { %v280_v39 = vsub.f32 1.0, %v279_v17  ;;  %v856_v17 = vsel %vm250_vm5, %v1497_v62, %v855_v63 }
 0x1d4   :  { %v281_v23 = vmul.f32 %v1598_v16, %v280_v39 }
 0x1d6   :  { %v282_v25 = vadd.f32 %v1598_v16, %v281_v23 }
 0x1d8   :  { %v286_v27 = vsel %vm285_vm9, %v1598_v16, %v282_v25  ;;  %vm467_vm9 = vcmask 1047559  }
 0x1d9   :  { %v291_v28 = vsel %vm288_vm10, %v290_v26, %v286_v27  ;;  %v1528_v27 = vsel %vm1067_vm15, 1.0, %v2833_v37  ;;  %vm540_vm10 = vcmask 785408   ;;  %vm1306_vm15 = vcmp.lt.s32.totalorder %v1925_v54, 13 }
 0x1da   :  { %v318_v29 = vperm.slane %v291_v28, 1  ;;  %v293_v30 = vperm.slane %v291_v28, 0 }
 0x1dc   :  { %329 = vperm.xlu2 %1587, %v318_v29   ;;  %323 = vperm.xlu1 %1586, %v318_v29  }
 0x1dd   :  { %298 = vperm.xlu0 %1588, %v293_v30  }
 0x1e4   :  { %1589 = vset.pattern.permute.xlu1 %v308_v31  ;;  %304 = vperm.xlu2 %1587, %v293_v30  }
 0x1e5   :  { %1593 = vset.pattern.permute.xlu0 %v314_v32 }
 0x1e6   :  { %857 = vrot.lane.b32.xlu0 %v856_v17, %s1677_s17  ;;  %s2009_s17 = sld [smem:[#allocation9 + $0xf]] }
 0x1ec   :  { %335 = vperm.xlu1 %1589, %v318_v29   ;;  %1590 = vset.pattern.permute.xlu2 %v308_v31  ;;  %2863 = sst [smem:[#allocation32_spill]] %s2009_s17 }
 0x1ed   :  { %s2036_s17 = sld [smem:[#allocation9 + $0x10]] }
 0x1f3   :  { %2870 = sst [smem:[#allocation39_spill]] %s2036_s17 }
 0x1f4   :  { %1591 = vset.pattern.permute.xlu1 %v314_v32  ;;  %310 = vperm.xlu2 %1590, %v293_v30   ;;  %s2047_s17 = sld [smem:[#allocation9 + $0x2d]] }
 0x1fa   :  { %2874 = sst [smem:[#allocation43_spill]] %s2047_s17 }
 0x1fb   :  { %s2057_s17 = sld [smem:[#allocation9 + $0x52]] }
 0x1fc   :  { %341 = vperm.xlu1 %1591, %v318_v29   ;;  %1592 = vset.pattern.permute.xlu2 %v314_v32  ;;  %v1527_v32 = vsel %vm1066_vm0, 1.0, %v2833_v37  ;;  %vm612_vm0 = vcmp.ge.s32.totalorder %v1907_v49, 3 }
 0x201   :  { %2879 = sst [smem:[#allocation48_spill]] %s2057_s17 }
 0x202   :  { %s2066_s17 = sld [smem:[#allocation9 + $0x5f]] }
 0x204   :  { %316 = vperm.xlu2 %1592, %v293_v30  }
 0x208   :  { %2883 = sst [smem:[#allocation52_spill]] %s2066_s17 }
 0x209   :  { %s2079_s17 = sld [smem:[#allocation9 + $0x22]] }
 0x20f   :  { %2886 = sst [smem:[#allocation55_spill]] %s2079_s17 }
 0x210   :  { %s2091_s17 = sld [smem:[#allocation9 + $0x30]] }
 0x211   :  { %s2912_s9 = sld [smem:[#allocation55_spill]] }
 0x216   :  { %2888 = sst [smem:[#allocation57_spill]] %s2091_s17 }
 0x217   :  { %s2913_s17 = sld [smem:[#allocation56_spill]] }
 0x236   :  { %v1857_v33 = vpop.permute.xlu2 %329 }
 0x237   :  { %v1965_v16 = vmul.f32 %v1857_v33, %v1764_v10 }
 0x23e   :  { %v305_v34 = vpop.permute.xlu2 %304 }
 0x23f   :  { %v1876_v42 = vmul.f32 %v305_v34, %v1768_v12  ;;  %v1891_v45 = vmul.f32 %v305_v34, %v1766_v11  ;;  %v1482_v34 = vsel %vm724_vm1, 1.0, %v2833_v37  ;;  %vm611_vm1 = vcmp.ge.s32.totalorder %v1925_v54, 3 }
 0x24e   :  { %v311_v36 = vpop.permute.xlu2 %310  ;;  %v324_v47 = vpop.permute.xlu1 %323 }
 0x24f   :  { %v299_v35 = vpop.permute.xlu0 %298  ;;  %v1912_v50 = vmul.f32 %v311_v36, %v1754_v5  ;;  %v396_v5 = vmul.f32 32.0, %v1903_v48  ;;  %v1948_v59 = vmul.f32 %v324_v47, %v1744_v0  ;;  %v1954_v3 = vmul.f32 %v324_v47, %v1746_v1 }
 0x250   :  { %v1867_v38 = vmul.f32 %v299_v35, %v1752_v4  ;;  %v1882_v4 = vmul.f32 %v299_v35, %v1748_v2  ;;  %v1899_v2 = vmul.f32 %v311_v36, %v1756_v6  ;;  %v1961_v0 = vmul.f32 %v1857_v33, %v1762_v9 }
 0x251   :  { %v397_v61 = vsub.f32 1.0, %v396_v5  ;;  %v433_v26 = vmax.f32 %v1954_v3, %v1965_v16  ;;  %v1076_v33 = vrot.slane %v1528_v27, 6  ;;  %v735_v5 = vrot.slane %v1482_v34, 6 }
 0x252   :  { %v368_v44 = vadd.f32 %v1876_v42, %v1867_v38  ;;  %v415_v12 = vmax.f32 %v1867_v38, %v1876_v42  ;;  %v359_v43 = vadd.f32 %v1891_v45, %v1882_v4  ;;  %v377_v9 = vadd.f32 %v1961_v0, %v1948_v59 }
 0x253   :  { %v398_v10 = vmul.f32 %v1903_v48, %v397_v61 }
 0x254   :  { %v369_v6 = vadd.f32 %v368_v44, %v1899_v2  ;;  %v416_v53 = vmax.f32 %v415_v12, %v1899_v2  ;;  %v360_v55 = vadd.f32 %v359_v43, %v1912_v50  ;;  %v1077_v43 = vsel %vm250_vm5, %v1527_v32, %v1076_v33 }
 0x255   :  { %1078 = vrot.lane.b32.xlu0 %v1077_v43, %s1678_s10  ;;  %s2032_s10 = sld [smem:[#allocation9 + $0x2b]] }
 0x25b   :  { %2868 = sst [smem:[#allocation37_spill]] %s2032_s10 }
 0x25c   :  { %s2043_s10 = sld [smem:[#allocation9 + $0x23]] }
 0x25e   :  { %v317_v11 = vpop.permute.xlu2 %316  ;;  %v336_v60 = vpop.permute.xlu1 %335 }
 0x25f   :  { %v1915_v51 = vmul.f32 %v317_v11, %v1786_v21  ;;  %v1921_v52 = vmul.f32 %v317_v11, %v1784_v20  ;;  %v406_v21 = vmax.f32 %v1882_v4, %v1891_v45  ;;  %v1971_v1 = vmul.f32 %v336_v60, %v1770_v13 }
 0x260   :  { %v1974_v39 = vmul.f32 %v336_v60, %v1772_v14  ;;  %v386_v13 = vadd.f32 %v1965_v16, %v1954_v3  ;;  %v424_v14 = vmax.f32 %v1948_v59, %v1961_v0  ;;  %v1481_v11 = vsel %vm723_vm2, 1.0, %v2833_v37 }
 0x261   :  { %v370_v20 = vadd.f32 %v369_v6, %v1915_v51  ;;  %v417_v56 = vmax.f32 %v416_v53, %v1915_v51  ;;  %v361_v57 = vadd.f32 %v360_v55, %v1921_v52  ;;  %v407_v8 = vmax.f32 %v406_v21, %v1912_v50 }
 0x262   :  { %v378_v28 = vadd.f32 %v377_v9, %v1971_v1  ;;  %v387_v29 = vadd.f32 %v386_v13, %v1974_v39  ;;  %v425_v35 = vmax.f32 %v424_v14, %v1971_v1  ;;  %v434_v36 = vmax.f32 %v433_v26, %v1974_v39  ;;  %2872 = sst [smem:[#allocation41_spill]] %s2043_s10 }
 0x263   :  { %v371_v58 = vrot.slane %v370_v20, 4  ;;  %v418_v15 = vrot.slane %v417_v56, 4  ;;  %v362_v22 = vrot.slane %v361_v57, 4  ;;  %v408_v23 = vmax.f32 %v407_v8, %v1921_v52  ;;  %s2053_s10 = sld [smem:[#allocation9 + $0x44]] }
 0x264   :  { %vm740_vm2 = vcmask 637952  }
 0x265   :  { %v372_v7 = vadd.f32 %v371_v58, %v370_v20  ;;  %v419_v25 = vmax.f32 %v417_v56, %v418_v15  ;;  %v363_v30 = vadd.f32 %v362_v22, %v361_v57  ;;  %v409_v31 = vrot.slane %v408_v23, 4 }
 0x266   :  { %v399_v20 = vadd.f32 %v1903_v48, %v398_v10  ;;  %v736_v57 = vsel %vm250_vm5, %v1481_v11, %v735_v5 }
 0x267   :  { %v373_v24 = vrot.slane %v372_v7, 2  ;;  %v420_v44 = vrot.slane %v419_v25, 2  ;;  %v364_v6 = vrot.slane %v363_v30, 2  ;;  %v410_v53 = vmax.f32 %v408_v23, %v409_v31  ;;  %737 = vrot.lane.b32.xlu2 %v736_v57, %s1679_s7  ;;  %s2045_s7 = sld [smem:[#allocation9 + $0x54]] }
 0x268   :  { %v401_v23 = vsel %vm400_vm6, %v1903_v48, %v399_v20  ;;  %vm607_vm6 = vcmask 916480  }
 0x269   :  { %v374_v41 = vadd.f32 %v373_v24, %v372_v7  ;;  %v421_v40 = vmax.f32 %v419_v25, %v420_v44  ;;  %v365_v63 = vadd.f32 %v364_v6, %v363_v30  ;;  %v411_v7 = vrot.slane %v410_v53, 2  ;;  %2877 = sst [smem:[#allocation46_spill]] %s2053_s10 }
 0x26a   :  { %s2063_s10 = sld [smem:[#allocation9 + $0x2e]] }
 0x26b   :  { %v375_v56 = vrot.slane %v374_v41, 1  ;;  %v422_v10 = vrot.slane %v421_v40, 1  ;;  %v366_v26 = vrot.slane %v365_v63, 1  ;;  %v412_v27 = vmax.f32 %v410_v53, %v411_v7 }
 0x26d   :  { %v376_v9 = vadd.f32 %v375_v56, %v374_v41  ;;  %2873 = sst [smem:[#allocation42_spill]] %s2045_s7  ;;  %v423_v32 = vmax.f32 %v421_v40, %v422_v10  ;;  %v413_v41 = vrot.slane %v412_v27, 1  ;;  %v367_v44 = vadd.f32 %v366_v26, %v365_v63 }
 0x26e   :  { %v342_v12 = vpop.permute.xlu1 %341  ;;  %s2055_s7 = sld [smem:[#allocation9 + $0x21]] }
 0x26f   :  { %v2012_v46 = vmul.f32 %v342_v12, %v1780_v18  ;;  %v2015_v47 = vmul.f32 %v342_v12, %v1782_v19  ;;  %v403_v48 = vmul.f32 %v401_v23, %v376_v9  ;;  %v475_v6 = vrot.slane %v423_v32, 6 }
 0x270   :  { %2882 = sst [smem:[#allocation51_spill]] %s2063_s10  ;;  %v664_v9 = vstv %s1879_s25  ;;  %s2938_s25 = smov 96  }
 0x271   :  { %2864 = vst [vmem:[#allocation33_spill] sm:$0xff] %v2012_v46  ;;  %v379_v18 = vadd.f32 %v378_v28, %v2012_v46  ;;  %v388_v19 = vadd.f32 %v387_v29, %v2015_v47  ;;  %v426_v21 = vmax.f32 %v425_v35, %v2012_v46  ;;  %v435_v55 = vmax.f32 %v434_v36, %v2015_v47  ;;  %s2074_s10 = sld [smem:[#allocation9 + $0x60]] }
 0x272   :  { %v452_v53 = vrot.slane %v403_v48, 6  ;;  %v1031_v48 = vstv %s1928_s11 }
 0x273   :  { %v380_v58 = vrot.slane %v379_v18, 4  ;;  %v389_v60 = vrot.slane %v388_v19, 4  ;;  %v427_v61 = vrot.slane %v426_v21, 4  ;;  %v436_v62 = vrot.slane %v435_v55, 4 }
 0x274   :  { %2878 = sst [smem:[#allocation47_spill]] %s2055_s7 }
 0x275   :  { %v381_v8 = vadd.f32 %v380_v58, %v379_v18  ;;  %v390_v15 = vadd.f32 %v389_v60, %v388_v19  ;;  %v428_v17 = vmax.f32 %v426_v21, %v427_v61  ;;  %v437_v22 = vmax.f32 %v435_v55, %v436_v62  ;;  %s2169_s7 = sld [smem:[#allocation9 + $0x3b]] }
 0x276   :  { %v414_v21 = vmax.f32 %v412_v27, %v413_v41  ;;  %v402_v55 = vmul.f32 %v401_v23, %v367_v44  ;;  %v690_v62 = vstv %s1864_s22  ;;  %v1003_v27 = vstv %s1896_s28  ;;  %s2892_s28 = sld [smem:[#allocation34_spill]] }
 0x277   :  { %v382_v13 = vrot.slane %v381_v8, 2  ;;  %v391_v14 = vrot.slane %v390_v15, 2  ;;  %v429_v24 = vrot.slane %v428_v17, 2  ;;  %v438_v25 = vrot.slane %v437_v22, 2  ;;  %2885 = sst [smem:[#allocation54_spill]] %s2074_s10 }
 0x278   :  { %v454_v58 = vsel %vm250_vm5, %v402_v55, %v452_v53  ;;  %v477_v60 = vsel %vm250_vm5, %v414_v21, %v475_v6  ;;  %v934_v41 = vstv %s1951_s14  ;;  %v1243_v44 = vstv %s1957_s15  ;;  %s2904_s14 = sld [smem:[#allocation44_spill]] }
 0x279   :  { %v383_v28 = vadd.f32 %v382_v13, %v381_v8  ;;  %v392_v29 = vadd.f32 %v391_v14, %v390_v15  ;;  %v430_v30 = vmax.f32 %v428_v17, %v429_v24  ;;  %v439_v31 = vmax.f32 %v437_v22, %v438_v25  ;;  %s2905_s15 = sld [smem:[#allocation45_spill]] }
 0x27a   :  { %v692_v8 = vstv %s1859_s3  ;;  %v782_v15 = vstv %s1870_s23  ;;  %v784_v22 = vstv %s1861_s4  ;;  %v903_v14 = vstv %s1884_s26  ;;  %s2109_s26 = sld [smem:[#allocation9 + $0x3a]] }
 0x27b   :  { %v384_v33 = vrot.slane %v383_v28, 1  ;;  %v393_v34 = vrot.slane %v392_v29, 1  ;;  %v431_v35 = vrot.slane %v430_v30, 1  ;;  %v440_v36 = vrot.slane %v439_v31, 1  ;;  %s2183_s4 = sld [smem:[#allocation9 + $0xd]] }
 0x27c   :  { %v906_v24 = vstv %s1888_s27  ;;  %s2103_s27 = sld [smem:[#allocation9 + $0x9]]  ;;  %v1151_v6 = vstv %s1989_s19  ;;  %v1153_v53 = vstv %s1996_s20  ;;  %v650_v21 = vstv %s2892_s28 }
 0x27d   :  { %v385_v12 = vadd.f32 %v384_v33, %v383_v28  ;;  %v394_v43 = vadd.f32 %v393_v34, %v392_v29  ;;  %v441_v11 = vmax.f32 %v439_v31, %v440_v36  ;;  %v432_v18 = vmax.f32 %v430_v30, %v431_v35  ;;  %s2133_s20 = sld [smem:[#allocation9 + $0x3d]] }
 0x27e   :  { %v1005_v28 = vstv %s1901_s29  ;;  %v810_v30 = vstv %s1909_s30  ;;  %v812_v31 = vstv %s1918_s8  ;;  %v1033_v33 = vstv %s1931_s0  ;;  %s2891_s29 = sld [smem:[#allocation32_spill]] }
 0x27f   :  { %v405_v5 = vmul.f32 %v401_v23, %v394_v43  ;;  %v476_v19 = vrot.slane %v441_v11, 6  ;;  %v404_v20 = vmul.f32 %v401_v23, %v385_v12  ;;  %v662_v23 = vstv %s1873_s24  ;;  %s2894_s30 = sld [smem:[#allocation35_spill]] }
 0x280   :  { %v1123_v34 = vstv %s1938_s5  ;;  %v1125_v35 = vstv %s1942_s12  ;;  %2893 = sst [smem:[#allocation32_spill]] %s2109_s26  ;;  %v932_v36 = vstv %s1945_s13  ;;  %v1245_v12 = vstv %s1968_s16 }
 0x281   :  { %v453_v56 = vrot.slane %v405_v5, 6  ;;  %v478_v40 = vsel %vm250_vm5, %v432_v18, %v476_v19  ;;  %s2895_s8 = sld [smem:[#allocation36_spill]]  ;;  %v1271_v43 = vstv %s1977_s1  ;;  %v1273_v11 = vstv %s1983_s18  ;;  %s2939_s1 = smov 64  }
 0x282   :  { %v481_v57 = vrot.slane %v478_v40, 7  ;;  %2890 = sst [smem:[#allocation59_spill]] %s2103_s27  ;;  %v676_v5 = vstv %s2000_s21  ;;  %v678_v18 = vstv %s2005_s2 }
 0x283   :  { %v455_v61 = vsel %vm250_vm5, %v404_v20, %v453_v56  ;;  %s2115_s27 = sld [smem:[#allocation9 + $0xb]] }
 0x284   :  { %v461_v63 = vrot.slane %v455_v61, 7  ;;  %v482_v7 = vsel %vm167_vm3, %v481_v57, %v477_v60  ;;  %s2121_s26 = sld [smem:[#allocation9 + $0x3c]]  ;;  %v648_v19 = vstv %s2891_s29 }
 0x285   :  { %v483_v17 = vsel %vm463_vm7, %v481_v57, %v482_v7  ;;  %s2903_s13 = sld [smem:[#allocation43_spill]]  ;;  %v546_v55 = vstv %s2894_s30 }
 0x286   :  { %v462_v10 = vsel %vm167_vm3, %v461_v63, %v454_v58  ;;  %v484_v13 = vsel %vm465_vm8, %v481_v57, %v483_v17  ;;  %s2127_s16 = sld [smem:[#allocation9 + $0xc]] }
 0x287   :  { %v464_v25 = vsel %vm463_vm7, %v461_v63, %v462_v10  ;;  %v485_v26 = vsel %vm467_vm9, %v481_v57, %v484_v13  ;;  %s2139_s28 = sld [smem:[#allocation9 + $0x8]]  ;;  %v1167_v57 = vstv %s2074_s10  ;;  %s2838_s10 = smov 64  }
 0x288   :  { %v466_v29 = vsel %vm465_vm8, %v461_v63, %v464_v25  ;;  %487 = vst [vmem:[#allocation3 + $0x2] sm:$0xf] %v485_v26  ;;  %s2909_s2 = sld [smem:[#allocation51_spill]]  ;;  %v1257_v26 = vstv %s2912_s9  ;;  %v1259_v25 = vstv %s2913_s17  ;;  %s2840_s17 = smov 96   ;;  %vm860_vm8 = vcmask 646144  }
 0x289   :  { %v468_v32 = vsel %vm467_vm9, %v461_v63, %v466_v29  ;;  %2898 = sst [smem:[#allocation35_spill]] %s2115_s27  ;;  %vm1081_vm9 = vcmask 662528  }
 0x28a   :  { %470 = vst [vmem:[#allocation2 + $0x2] sm:$0xf] %v468_v32  ;;  %s2149_s0 = sld [smem:[#allocation9 + $0x39]] }
 0x28b   :  { %s2911_s12 = sld [smem:[#allocation53_spill]] }
 0x28c   :  { %s2155_s5 = sld [smem:[#allocation9 + $0xa]] }
 0x28d   :  { %s2914_s18 = sld [smem:[#allocation57_spill]] }
 0x28e   :  { %s2916_s19 = sld [smem:[#allocation59_spill]] }
 0x28f   :  { %v2141_v63 = vld [vmem:[#allocation3] sm:$0x3f]  ;;  %s2917_s27 = sld [smem:[#allocation32_spill]] }
 0x290   :  { %v2143_v7 = vld [vmem:[#allocation3 + $0x2] sm:$0x3f]  ;;  %v785_v60 = vmul.f32 %v784_v22, %v2141_v63  ;;  %s2918_s3 = sld [smem:[#allocation35_spill]]  ;;  %v665_v22 = vmul.f32 %v664_v9, %v2141_v63 }
 0x291   :  { %v2157_v58 = vld [vmem:[#allocation2] sm:$0x3f]  ;;  %v693_v40 = vmul.f32 %v692_v8, %v2143_v7  ;;  %v1165_v29 = vstv %s2911_s12  ;;  %s2274_s29 = sld [smem:[#allocation9 + $0x38]] }
 0x292   :  { %v2159_v61 = vld [vmem:[#allocation2 + $0x2] sm:$0x3f]  ;;  %v783_v32 = vmul.f32 %v782_v15, %v2157_v58  ;;  %v663_v8 = vmul.f32 %v662_v23, %v2157_v58  ;;  %v1287_v23 = vstv %s2915_s6  ;;  %s2940_s21 = sld [smem:[#allocation37_spill]] }
 0x293   :  { %v691_v37 = vmul.f32 %v690_v62, %v2159_v61  ;;  %v902_v15 = vld [vmem:[#allocation2 + $0x2] sm:$0xf]  ;;  %v1285_v56 = vstv %s2914_s18  ;;  %s2237_s18 = sld [smem:[#allocation9 + $0x32]] }
 0x294   :  { %v786_v13 = vadd.f32 %v785_v60, %v783_v32  ;;  %v666_v10 = vadd.f32 %v665_v22, %v663_v8  ;;  %v761_v17 = vstv %s2916_s19  ;;  %v904_v32 = vmul.f32 %v903_v14, %v902_v15  ;;  %s2287_s30 = sld [smem:[#allocation9 + $0x2a]] }
 0x295   :  { %v694_v62 = vadd.f32 %v693_v40, %v691_v37  ;;  %v763_v9 = vstv %s2917_s27  ;;  %v905_v37 = vld [vmem:[#allocation3 + $0x2] sm:$0xf]  ;;  %s2198_s27 = sld [smem:[#allocation9 + $0x3e]]  ;;  %v1004_v8 = vmul.f32 %v1003_v27, %v2159_v61  ;;  %v1032_v22 = vmul.f32 %v1031_v48, %v2159_v61 }
 0x296   :  { %v982_v20 = vstv %s2918_s3  ;;  %788 = vrot.lane.b32.xlu2 %v786_v13, %s2840_s17  ;;  %668 = vrot.lane.b32.xlu1 %v666_v10, %s2840_s17  ;;  %v811_v13 = vmul.f32 %v810_v30, %v2159_v61  ;;  %v907_v14 = vmul.f32 %v906_v24, %v905_v37  ;;  %v1006_v27 = vmul.f32 %v1005_v28, %v2143_v7  ;;  %s2260_s17 = sld [smem:[#allocation9 + $0x7]] }
 0x297   :  { %696 = vrot.lane.b32.xlu0 %v694_v62, %s2838_s10  ;;  %s2212_s10 = sld [smem:[#allocation9 + $0x1]]  ;;  %v1124_v62 = vmul.f32 %v1123_v34, %v2159_v61  ;;  %v813_v30 = vmul.f32 %v812_v31, %v2143_v7  ;;  %v1034_v48 = vmul.f32 %v1033_v33, %v2143_v7  ;;  %v1126_v34 = vmul.f32 %v1125_v35, %v2143_v7 }
 0x298   :  { %v881_v15 = vstv %s2155_s5  ;;  %v883_v10 = vstv %s2169_s7  ;;  %v1222_v24 = vstv %s2183_s4  ;;  %v908_v37 = vadd.f32 %v907_v14, %v904_v32  ;;  %s2941_s22 = sld [smem:[#allocation46_spill]] }
 0x299   :  { %v1007_v40 = vadd.f32 %v1006_v27, %v1004_v8  ;;  %v814_v28 = vadd.f32 %v813_v30, %v811_v13  ;;  %v1035_v60 = vadd.f32 %v1034_v48, %v1032_v22  ;;  %v1127_v31 = vadd.f32 %v1126_v34, %v1124_v62  ;;  %s2942_s11 = sld [smem:[#allocation47_spill]] }
 0x29a   :  { %v933_v33 = vmul.f32 %v932_v36, %v2159_v61  ;;  %v1244_v35 = vmul.f32 %v1243_v44, %v2159_v61  ;;  %v1272_v32 = vmul.f32 %v1271_v43, %v2159_v61  ;;  %v935_v8 = vmul.f32 %v934_v41, %v2143_v7  ;;  %s2943_s23 = sld [smem:[#allocation48_spill]] }
 0x29b   :  { %v1152_v13 = vmul.f32 %v1151_v6, %v2159_v61  ;;  %v677_v22 = vmul.f32 %v676_v5, %v2159_v61  ;;  %v649_v36 = vmul.f32 %v648_v19, %v2157_v58  ;;  %v1246_v41 = vmul.f32 %v1245_v12, %v2143_v7  ;;  %s2296_s9 = sld [smem:[#allocation9 + $0x5b]] }
 0x29c   :  { %v1274_v44 = vmul.f32 %v1273_v11, %v2143_v7  ;;  %v547_v43 = vmul.f32 %v546_v55, %v2157_v58  ;;  %v1224_v6 = vstv %s2198_s27  ;;  %v1154_v5 = vmul.f32 %v1153_v53, %v2143_v7  ;;  %s2946_s12 = sld [smem:[#allocation49_spill]] }
 0x29d   :  { %v679_v19 = vmul.f32 %v678_v18, %v2143_v7  ;;  %v651_v12 = vmul.f32 %v650_v21, %v2141_v63  ;;  %v634_v11 = vstv %s2212_s10  ;;  %v936_v55 = vadd.f32 %v935_v8, %v933_v33  ;;  %s2947_s6 = sld [smem:[#allocation50_spill]] }
 0x29e   :  { %1009 = vrot.lane.b32.xlu2 %v1007_v40, %s2938_s25  ;;  %816 = vrot.lane.b32.xlu1 %v814_v28, %s2939_s1  ;;  %v2289_v40 = vadd.f32 %v1246_v41, %v1244_v35  ;;  %v2291_v62 = vadd.f32 %v1274_v44, %v1272_v32  ;;  %v2944_v53 = vstv %s2895_s8  ;;  %v2298_v14 = vadd.f32 %v1154_v5, %v1152_v13  ;;  %s2307_s19 = sld [smem:[#allocation9 + $0xe]] }
 0x29f   :  { %910 = vrot.lane.b32.xlu0 %v908_v37, %s2938_s25  ;;  %v549_v18 = vmul.f32 %v2944_v53, %v2141_v63  ;;  %v2300_v21 = vadd.f32 %v679_v19, %v677_v22  ;;  %v2302_v27 = vadd.f32 %v651_v12, %v649_v36  ;;  %v2948_v30 = vstv %s2903_s13  ;;  %s2951_s8 = sld [smem:[#allocation52_spill]] }
 0x2a0   :  { %v947_v48 = vmul.f32 %v2948_v30, %v2159_v61  ;;  %v2949_v37 = vstv %s2940_s21  ;;  %v2950_v33 = vstv %s2904_s14  ;;  %v2952_v32 = vstv %s2905_s15  ;;  %s2334_s21 = sld [smem:[#allocation9 + $0x2]] }
 0x2a1   :  { %2945 = sst [smem:[#allocation36_spill]] %s2296_s9  ;;  %v2309_v34 = vadd.f32 %v549_v18, %v547_v43  ;;  %v2314_v28 = vmul.f32 %v2949_v37, %v2159_v61  ;;  %v949_v35 = vmul.f32 %v2950_v33, %v2143_v7  ;;  %v1110_v8 = vmul.f32 %v2952_v32, %v2157_v58 }
 0x2a2   :  { %s2322_s9 = sld [smem:[#allocation9 + $0x3f]]  ;;  %v2954_v13 = vstv %s2941_s22  ;;  %v2955_v36 = vstv %s2942_s11  ;;  %v2956_v44 = vstv %s2943_s23  ;;  %v636_v5 = vstv %s2237_s18  ;;  %s1682_s23 = smov 32  }
 0x2a3   :  { %v1112_v22 = vmul.f32 %v2954_v13, %v2141_v63  ;;  %v1138_v41 = vmul.f32 %v2955_v36, %v2159_v61  ;;  %v1140_v43 = vmul.f32 %v2956_v44, %v2143_v7  ;;  %v2336_v19 = vadd.f32 %v949_v35, %v947_v48  ;;  %s2347_s22 = sld [smem:[#allocation9 + $0x33]] }
 0x2a4   :  { %v2959_v12 = vstv %s2946_s12  ;;  %v2960_v18 = vstv %s2947_s6  ;;  %v2961_v37 = vstv %s2909_s2  ;;  %v1166_v36 = vmul.f32 %v1165_v29, %v2159_v61  ;;  %s2359_s12 = sld [smem:[#allocation9 + $0x1c]] }
 0x2a5   :  { %v1230_v53 = vmul.f32 %v2959_v12, %v2157_v58  ;;  %v1232_v30 = vmul.f32 %v2960_v18, %v2141_v63  ;;  %v1046_v33 = vmul.f32 %v2961_v37, %v2159_v61  ;;  %v2349_v32 = vadd.f32 %v1112_v22, %v1110_v8  ;;  %s2372_s6 = sld [smem:[#allocation9 + $0x4d]] }
 0x2a6   :  { %v2351_v13 = vadd.f32 %v1140_v43, %v1138_v41  ;;  %v2965_v48 = vstv %s2951_s8  ;;  %1129 = vrot.lane.b32.xlu2 %v1127_v31, %s2938_s25  ;;  %v1168_v22 = vmul.f32 %v1167_v57, %v2143_v7  ;;  %v1258_v41 = vmul.f32 %v1257_v26, %v2159_v61  ;;  %938 = vrot.lane.b32.xlu1 %v936_v55, %s2939_s1  ;;  %s2399_s8 = sld [smem:[#allocation9 + $0x37]] }
 0x2a7   :  { %v1048_v35 = vmul.f32 %v2965_v48, %v2143_v7  ;;  %1037 = vrot.lane.b32.xlu0 %v1035_v60, %s2939_s1  ;;  %v2363_v8 = vadd.f32 %v1232_v30, %v1230_v53  ;;  %v524_v44 = vstv %s2260_s17  ;;  %v1260_v60 = vmul.f32 %v1259_v25, %v2143_v7  ;;  %s2386_s17 = sld [smem:[#allocation9 + $0x6]] }
 0x2a8   :  { %v1286_v57 = vmul.f32 %v1285_v56, %v2159_v61  ;;  %v1288_v26 = vmul.f32 %v1287_v23, %v2143_v7  ;;  %v2388_v31 = vadd.f32 %v1168_v22, %v1166_v36  ;;  %v764_v55 = vmul.f32 %v763_v9, %v2141_v63  ;;  %s2411_s24 = sld [smem:[#allocation9 + $0x4]] }
 0x2a9   :  { %v2375_v29 = vadd.f32 %v1048_v35, %v1046_v33  ;;  %v762_v25 = vmul.f32 %v761_v17, %v2157_v58  ;;  %v983_v56 = vmul.f32 %v982_v20, %v2157_v58  ;;  %v2401_v43 = vadd.f32 %v1260_v60, %v1258_v41  ;;  %s2456_s5 = sld [smem:[#allocation9 + $0x5]] }
 0x2aa   :  { %v2403_v23 = vadd.f32 %v1288_v26, %v1286_v57  ;;  %v2968_v12 = vstv %s2121_s26  ;;  %v2969_v9 = vstv %s2127_s16  ;;  %v2970_v30 = vstv %s2133_s20  ;;  %s2424_s26 = sld [smem:[#allocation9 + $0x35]] }
 0x2ab   :  { %v985_v53 = vmul.f32 %v2968_v12, %v2141_v63  ;;  %v1103_v18 = vmul.f32 %v2969_v9, %v2157_v58  ;;  %v2413_v17 = vadd.f32 %v764_v55, %v762_v25  ;;  %v1105_v20 = vmul.f32 %v2970_v30, %v2141_v63  ;;  %s2973_s16 = sld [smem:[#allocation36_spill]] }
 0x2ac   :  { %v2971_v37 = vstv %s2149_s0  ;;  %v2972_v48 = vstv %s2139_s28  ;;  %v882_v22 = vmul.f32 %v881_v15, %v2157_v58  ;;  %v884_v41 = vmul.f32 %v883_v10, %v2141_v63  ;;  %s2437_s0 = sld [smem:[#allocation9 + $0x3]] }
 0x2ad   :  { %v644_v33 = vmul.f32 %v2971_v37, %v2141_v63  ;;  %v642_v35 = vmul.f32 %v2972_v48, %v2157_v58  ;;  %v2426_v36 = vadd.f32 %v985_v53, %v983_v56  ;;  %v1223_v60 = vmul.f32 %v1222_v24, %v2157_v58  ;;  %s2447_s28 = sld [smem:[#allocation9 + $0x34]] }
 0x2ae   :  { %v2439_v57 = vadd.f32 %v1105_v20, %v1103_v18  ;;  %v1225_v55 = vmul.f32 %v1224_v6, %v2141_v63  ;;  %v637_v25 = vmul.f32 %v636_v5, %v2141_v63  ;;  %v2449_v15 = vadd.f32 %v884_v41, %v882_v22  ;;  %1277 = vrot.lane.b32.xlu2 %v2291_v62, %s2939_s1  ;;  %s2467_s27 = sld [smem:[#allocation9 + $0x36]] }
 0x2af   :  { %v2441_v26 = vadd.f32 %v644_v33, %v642_v35  ;;  %v635_v10 = vmul.f32 %v634_v11, %v2157_v58  ;;  %v525_v24 = vmul.f32 %v524_v44, %v2157_v58  ;;  %v526_v56 = vstv %s2274_s29  ;;  %1249 = vrot.lane.b32.xlu0 %v2289_v40, %s2938_s25  ;;  %1157 = vrot.lane.b32.xlu1 %v2298_v14, %s2939_s1  ;;  %s2476_s20 = sld [smem:[#allocation9]] }
 0x2b0   :  { %v2462_v6 = vadd.f32 %v1225_v55, %v1223_v60  ;;  %v527_v5 = vmul.f32 %v526_v56, %v2141_v63  ;;  %v591_v12 = vstv %s2287_s30  ;;  %v531_v44 = vstv %s2307_s19  ;;  %s2483_s10 = sld [smem:[#allocation9 + $0x31]] }
 0x2b1   :  { %v593_v53 = vstv %s2973_s16  ;;  %v2471_v11 = vadd.f32 %v637_v25, %v635_v10  ;;  %v592_v40 = vmul.f32 %v591_v12, %v2159_v61  ;;  %v532_v18 = vmul.f32 %v531_v44, %v2157_v58  ;;  %s2494_s7 = sld [smem:[#allocation9 + $0x2c]]  ;;  %s1690_s16 = smov 124  }
 0x2b2   :  { %v594_v62 = vmul.f32 %v593_v53, %v2143_v7  ;;  %v2478_v9 = vadd.f32 %v527_v5, %v525_v24  ;;  %v533_v30 = vstv %s2322_s9  ;;  %v754_v20 = vstv %s2334_s21  ;;  %s2974_s3 = sld [smem:[#allocation39_spill]] }
 0x2b3   :  { %v534_v37 = vmul.f32 %v533_v30, %v2141_v63  ;;  %v755_v33 = vmul.f32 %v754_v20, %v2157_v58  ;;  %v756_v48 = vstv %s2347_s22  ;;  %v561_v22 = vstv %s2359_s12  ;;  %s2975_s4 = sld [smem:[#allocation41_spill]] }
 0x2b4   :  { %v2485_v14 = vadd.f32 %v594_v62, %v592_v40  ;;  %v757_v35 = vmul.f32 %v756_v48, %v2141_v63  ;;  %v564_v41 = vstv %s2372_s6  ;;  %v1215_v60 = vstv %s2386_s17  ;;  %s2501_s29 = sld [smem:[#allocation9 + $0x5d]]  ;;  %s1683_s17 = smov 112  }
 0x2b5   :  { %v2496_v55 = vadd.f32 %v534_v37, %v532_v18  ;;  %v562_v25 = vmul.f32 %v561_v22, %v2159_v61  ;;  %v565_v10 = vmul.f32 %v564_v41, %v2143_v7  ;;  %v1216_v24 = vmul.f32 %v1215_v60, %v2157_v58  ;;  %s2508_s30 = sld [smem:[#allocation9 + $0x12]] }
 0x2b6   :  { %v2503_v56 = vadd.f32 %v757_v35, %v755_v33  ;;  %v1217_v5 = vstv %s2399_s8  ;;  %v975_v12 = vstv %s2411_s24  ;;  %v977_v53 = vstv %s2424_s26  ;;  %682 = vrot.lane.b32.xlu2 %v2300_v21, %s2939_s1  ;;  %s2525_s9 = sld [smem:[#allocation9 + $0x1e]]  ;;  %s1684_s8 = smov 82  }
 0x2b7   :  { %v2510_v40 = vadd.f32 %v565_v10, %v562_v25  ;;  %v1218_v62 = vmul.f32 %v1217_v5, %v2141_v63  ;;  %v976_v44 = vmul.f32 %v975_v12, %v2157_v58  ;;  %v978_v18 = vmul.f32 %v977_v53, %v2141_v63  ;;  %552 = vrot.lane.b32.xlu0 %v2309_v34, %s2938_s25  ;;  %s2978_s19 = sld [smem:[#allocation38_spill]]  ;;  %s1685_s24 = smov 83  }
 0x2b8   :  { %v2976_v30 = vstv %s2974_s3  ;;  %v874_v48 = vstv %s2437_s0  ;;  %v876_v35 = vstv %s2447_s28  ;;  %654 = vrot.lane.b32.xlu1 %v2302_v27, %s2938_s25  ;;  %s2979_s13 = sld [smem:[#allocation42_spill]]  ;;  %s1688_s26 = smov 126  }
 0x2b9   :  { %v769_v20 = vmul.f32 %v2976_v30, %v2157_v58  ;;  %v2977_v37 = vstv %s2975_s4  ;;  %s2531_s14 = sld [smem:[#allocation9 + $0x43]]  ;;  %v2533_v21 = vadd.f32 %v1218_v62, %v1216_v24  ;;  %v2535_v34 = vadd.f32 %v978_v18, %v976_v44  ;;  %s1689_s0 = smov 125  }
 0x2ba   :  { %v578_v33 = vmul.f32 %v2977_v37, %v2159_v61  ;;  %s2980_s21 = sld [smem:[#allocation40_spill]]  ;;  %v875_v22 = vmul.f32 %v874_v48, %v2157_v58  ;;  %v877_v41 = vmul.f32 %v876_v35, %v2141_v63  ;;  %v1095_v60 = vstv %s2456_s5  ;;  %s1691_s28 = smov 123  }
 0x2bb   :  { %s2539_s15 = sld [smem:[#allocation9 + $0x4f]]  ;;  %v1097_v25 = vstv %s2467_s27  ;;  %v516_v10 = vstv %s2476_s20  ;;  %v519_v5 = vstv %s2483_s10  ;;  %v1096_v24 = vmul.f32 %v1095_v60, %v2157_v58  ;;  %s1692_s5 = smov 122  }
 0x2bc   :  { %v2545_v27 = vadd.f32 %v877_v41, %v875_v22  ;;  %v1098_v12 = vmul.f32 %v1097_v25, %v2141_v63  ;;  %v517_v53 = vmul.f32 %v516_v10, %v2157_v58  ;;  %v520_v37 = vmul.f32 %v519_v5, %v2141_v63  ;;  %s2560_s22 = sld [smem:[#allocation9 + $0x20]]  ;;  %s1694_s3 = smov [#allocation10]  }
 0x2bd   :  { %v2981_v62 = vstv %s2978_s19  ;;  %s2565_s11 = sld [smem:[#allocation9 + $0x51]]  ;;  %v989_v5 = vstv %s2508_s30  ;;  %s1431_s4 = sshll.u32 %s1694_s3, 4  ;;  %s1432_s4 = int_to_ptr.vmem [resolvable:$true] %s1431_s4 }
 0x2be   :  { %v707_v44 = vmul.f32 %v2981_v62, %v2143_v7  ;;  %v2982_v18 = vstv %s2979_s13  ;;  %v2562_v22 = vadd.f32 %v1098_v12, %v1096_v24  ;;  %v2567_v25 = vadd.f32 %v520_v37, %v517_v53  ;;  %s2571_s18 = sld [smem:[#allocation9 + $0x1f]]  ;;  %s2988_s13 = smov 16  }
 0x2bf   :  { %v580_v30 = vmul.f32 %v2982_v18, %v2143_v7  ;;  %v824_v62 = vstv %s2494_s7  ;;  %v796_v24 = vstv %s2525_s9  ;;  %s1503_s12 = sld [smem:[#allocation9 + $0x11]]  ;;  %v990_v53 = vmul.f32 %v989_v5, %v2157_v58  ;;  %s1693_s7 = smov 51  }
 0x2c0   :  { %v2983_v48 = vstv %s2980_s21  ;;  %v708_v41 = vadd.f32 %v707_v44, %v2314_v28  ;;  %v826_v28 = vstv %s2501_s29  ;;  %s1508_s2 = sld [smem:[#allocation9 + $0x50]]  ;;  %v797_v44 = vmul.f32 %v796_v24, %v2159_v61 }
 0x2c1   :  { %v771_v35 = vmul.f32 %v2983_v48, %v2141_v63  ;;  %v581_v60 = vadd.f32 %v580_v30, %v578_v33  ;;  %v991_v33 = vstv %s2531_s14  ;;  %v798_v12 = vstv %s2539_s15  ;;  %s1504_s6 = sld [smem:[#allocation9 + $0x42]]  ;;  %s2989_s14 = smov 256  }
 0x2c2   :  { %710 = vrot.lane.b32.xlu2 %v708_v41, %s1682_s23  ;;  %v827_v18 = vmul.f32 %v826_v28, %v2143_v7  ;;  %v992_v30 = vmul.f32 %v991_v33, %v2141_v63  ;;  %v799_v37 = vmul.f32 %v798_v12, %v2143_v7  ;;  %s2985_s10 = sld [smem:[#allocation60_spill]] }
 0x2c3   :  { %v772_v10 = vadd.f32 %v771_v35, %v769_v20  ;;  %583 = vrot.lane.b32.xlu0 %v581_v60, %s2939_s1  ;;  %v825_v20 = vmul.f32 %v824_v62, %v2159_v61  ;;  %v1017_v60 = vstv %s2560_s22  ;;  %v1019_v5 = vstv %s2565_s11  ;;  %s2986_s9 = sld [smem:[#allocation61_spill]] }
 0x2c4   :  { %v993_v35 = vadd.f32 %v992_v30, %v990_v53  ;;  %v800_v41 = vadd.f32 %v799_v37, %v797_v44  ;;  %v1018_v28 = vmul.f32 %v1017_v60, %v2159_v61  ;;  %v1020_v12 = vmul.f32 %v1019_v5, %v2143_v7 }
 0x2c5   :  { %774 = vrot.lane.b32.xlu1 %v772_v10, %s2938_s25  ;;  %v828_v48 = vadd.f32 %v827_v18, %v825_v20  ;;  %v918_v10 = vstv %s2571_s18  ;;  %v888_v62 = vstv %s1503_s12 }
 0x2c6   :  { %v920_v24 = vstv %s1508_s2  ;;  %v919_v33 = vmul.f32 %v918_v10, %v2159_v61  ;;  %v889_v20 = vmul.f32 %v888_v62, %v2157_v58  ;;  %v1021_v18 = vadd.f32 %v1020_v12, %v1018_v28  ;;  %v2619_v58 = vpop.permute.xlu2 %737 }
 0x2c7   :  { %v890_v46 = vstv %s1504_s6  ;;  %v921_v53 = vmul.f32 %v920_v24, %v2143_v7 }
 0x2c8   :  { %v891_v44 = vmul.f32 %v890_v46, %v2141_v63  ;;  %v2617_v46 = vpop.permute.xlu0 %857 }
 0x2c9   :  { %v922_v30 = vadd.f32 %v921_v53, %v919_v33  ;;  %s1433_s19 = sshll.u32 %s2986_s9, 4  ;;  %s1434_s19 = int_to_ptr.hbm [resolvable:$true] %s1433_s19 }
 0x2ca   :  { %830 = vrot.lane.b32.xlu2 %v828_v48, %s1682_s23  ;;  %v892_v37 = vadd.f32 %v891_v44, %v889_v20 }
 0x2cb   :  { %995 = vrot.lane.b32.xlu0 %v993_v35, %s2938_s25 }
 0x2cd   :  { %802 = vrot.lane.b32.xlu1 %v800_v41, %s2939_s1 }
 0x2d0   :  { %v2621_v61 = vpop.permute.xlu0 %1078 }
 0x2d2   :  { %1023 = vrot.lane.b32.xlu2 %v1021_v18, %s2939_s1 }
 0x2d3   :  { %924 = vrot.lane.b32.xlu0 %v922_v30, %s2939_s1 }
 0x2d5   :  { %894 = vrot.lane.b32.xlu1 %v892_v37, %s2938_s25 }
 0x2da   :  { %952 = vrot.lane.b32.xlu2 %v2336_v19, %s1682_s23 }
 0x2db   :  { %1143 = vrot.lane.b32.xlu0 %v2351_v13, %s2939_s1 }
 0x2dd   :  { %1115 = vrot.lane.b32.xlu1 %v2349_v32, %s2938_s25 }
 0x2e2   :  { %1235 = vrot.lane.b32.xlu2 %v2363_v8, %s2938_s25 }
 0x2e5   :  { %1051 = vrot.lane.b32.xlu1 %v2375_v29, %s1682_s23 }
 0x2ea   :  { %1171 = vrot.lane.b32.xlu2 %v2388_v31, %s1682_s23 }
 0x2ed   :  { %1263 = vrot.lane.b32.xlu1 %v2401_v43, %s2939_s1 }
 0x2f0   :  { %v789_v63 = vpop.permute.xlu2 %788 }
 0x2f1   :  { %v790_v8 = vrot.slane %v789_v63, 2 }
 0x2f3   :  { %v791_v35 = vsel %vm540_vm10, %v789_v63, %v790_v8 }
 0x2f4   :  { %v793_v62 = vadd.f32 %v791_v35, %v2413_v17 }
 0x2f5   :  { %1291 = vrot.lane.b32.xlu1 %v2403_v23, %s1682_s23 }
 0x2f8   :  { %v1010_v23 = vpop.permute.xlu2 %1009 }
 0x2f9   :  { %v1011_v5 = vrot.slane %v1010_v23, 6 }
 0x300   :  { %v1130_v53 = vpop.permute.xlu2 %1129 }
 0x308   :  { %v669_v19 = vpop.permute.xlu1 %668 }
 0x309   :  { %v697_v7 = vpop.permute.xlu0 %696  ;;  %v670_v32 = vrot.slane %v669_v19, 2 }
 0x30a   :  { %v698_v13 = vrot.slane %v697_v7, 6 }
 0x30b   :  { %v671_v29 = vsel %vm540_vm10, %v669_v19, %v670_v32 }
 0x30c   :  { %v673_v31 = vadd.f32 %v671_v29, %v2441_v26  ;;  %v699_v43 = vsel %vm571_vm11, %v698_v13, %v697_v7  ;;  %v1012_v26 = vsel %vm540_vm10, %v1011_v5, %v1010_v23  ;;  %v1131_v7 = vrot.slane %v1130_v53, 6 }
 0x30d   :  { %v1014_v30 = vadd.f32 %v1012_v26, %v2426_v36  ;;  %v2984_v13 = vmov 0.0  }
 0x30e   :  { %v701_v48 = vadd.f32 %v699_v43, %v673_v31  ;;  %v1544_v8 = vsel %vm1187_vm12, 1.0, %v2984_v13  ;;  %v1560_v31 = vsel %vm1307_vm13, 1.0, %v2984_v13  ;;  %vm1201_vm12 = vcmask 670720  }
 0x30f   :  { %v1196_v36 = vrot.slane %v1544_v8, 6  ;;  %v1316_v23 = vrot.slane %v1560_v31, 6  ;;  %vm1321_vm13 = vcmask 678912  }
 0x310   :  { %v817_v60 = vpop.permute.xlu1 %816  ;;  %717 = vrot.lane.b32.xlu0 %v701_v48, %s1683_s17  ;;  %v1543_v48 = vsel %vm1186_vm14, 1.0, %v2984_v13  ;;  %vm628_vm14 = vcmask 629760  }
 0x311   :  { %v911_v41 = vpop.permute.xlu0 %910  ;;  %v818_v10 = vrot.slane %v817_v60, 6  ;;  %v1197_v5 = vsel %vm250_vm5, %v1543_v48, %v1196_v36 }
 0x312   :  { %v912_v28 = vrot.slane %v911_v41, 6 }
 0x313   :  { %v819_v24 = vsel %vm571_vm11, %v818_v10, %v817_v60 }
 0x314   :  { %v821_v33 = vadd.f32 %v819_v24, %v793_v62  ;;  %v913_v20 = vsel %vm540_vm10, %v912_v28, %v911_v41  ;;  %v1559_v41 = vsel %vm1306_vm15, 1.0, %v2984_v13  ;;  %vm1089_vm15 = vcmask 1014784  }
 0x315   :  { %v915_v37 = vadd.f32 %v913_v20, %v2449_v15  ;;  %v1132_v15 = vsel %vm540_vm10, %v1131_v7, %v1130_v53  ;;  %v1317_v28 = vsel %vm250_vm5, %v1559_v41, %v1316_v23 }
 0x316   :  { %837 = vrot.lane.b32.xlu1 %v821_v33, %s1683_s17  ;;  %v1134_v62 = vadd.f32 %v1132_v15, %v2439_v57  ;;  %v1278_v33 = vpop.permute.xlu2 %1277 }
 0x318   :  { %v939_v44 = vpop.permute.xlu1 %938 }
 0x319   :  { %v1038_v12 = vpop.permute.xlu0 %1037  ;;  %v940_v17 = vrot.slane %v939_v44, 6 }
 0x31a   :  { %v1039_v18 = vrot.slane %v1038_v12, 6 }
 0x31b   :  { %v941_v19 = vsel %vm571_vm11, %v940_v17, %v939_v44 }
 0x31c   :  { %v1040_v63 = vsel %vm571_vm11, %v1039_v18, %v1038_v12  ;;  %v943_v29 = vadd.f32 %v941_v19, %v915_v37  ;;  %v1279_v12 = vrot.slane %v1278_v33, 6 }
 0x31d   :  { %v1042_v32 = vadd.f32 %v1040_v63, %v1014_v30 }
 0x31e   :  { %959 = vrot.lane.b32.xlu1 %v943_v29, %s1683_s17  ;;  %v1280_v18 = vsel %vm571_vm11, %v1279_v12, %v1278_v33  ;;  %v683_v29 = vpop.permute.xlu2 %682 }
 0x31f   :  { %1058 = vrot.lane.b32.xlu0 %v1042_v32, %s1683_s17  ;;  %v1465_v32 = vsel %vm611_vm1, 1.0, %v2984_v13  ;;  %vm1329_vm1 = vcmask 998400  }
 0x321   :  { %v1250_v43 = vpop.permute.xlu0 %1249  ;;  %v1158_v35 = vpop.permute.xlu1 %1157 }
 0x322   :  { %v1159_v60 = vrot.slane %v1158_v35, 6  ;;  %v1251_v10 = vrot.slane %v1250_v43, 6 }
 0x324   :  { %v1160_v24 = vsel %vm571_vm11, %v1159_v60, %v1158_v35  ;;  %v1252_v20 = vsel %vm540_vm10, %v1251_v10, %v1250_v43 }
 0x325   :  { %v1162_v26 = vadd.f32 %v1160_v24, %v1134_v62  ;;  %v1254_v57 = vadd.f32 %v1252_v20, %v2462_v6  ;;  %v684_v24 = vrot.slane %v683_v29, 6 }
 0x326   :  { %1318 = vrot.lane.b32.xlu1 %v1317_v28, %s1685_s24  ;;  %v711_v49 = vpop.permute.xlu2 %710 }
 0x327   :  { %1198 = vrot.lane.b32.xlu0 %v1197_v5, %s1684_s8  ;;  %1178 = vrot.lane.b32.xlu2 %v1162_v26, %s1683_s17  ;;  %v1282_v30 = vadd.f32 %v1280_v18, %v1254_v57  ;;  %v685_v20 = vsel %vm571_vm11, %v684_v24, %v683_v29  ;;  %v712_v12 = vrot.slane %v711_v49, 6 }
 0x329   :  { %v553_v53 = vpop.permute.xlu0 %552 }
 0x32a   :  { %v554_v44 = vrot.slane %v553_v53, 2  ;;  %v655_v8 = vpop.permute.xlu1 %654 }
 0x32b   :  { %v656_v60 = vrot.slane %v655_v8, 2 }
 0x32c   :  { %v555_v17 = vsel %vm540_vm10, %v553_v53, %v554_v44 }
 0x32d   :  { %v557_v7 = vadd.f32 %v555_v17, %v2478_v9  ;;  %v657_v62 = vsel %vm540_vm10, %v655_v8, %v656_v60  ;;  %v859_v60 = vrot.slane %v2617_v46, 6 }
 0x32e   :  { %597 = vrot.lane.b32.xlu1 %v2485_v14, %s1682_s23  ;;  %v831_v15 = vpop.permute.xlu2 %830  ;;  %v659_v28 = vadd.f32 %v657_v62, %v2471_v11 }
 0x32f   :  { %537 = vrot.lane.b32.xlu0 %v2496_v55, %s2938_s25  ;;  %1298 = vrot.lane.b32.xlu2 %v1282_v30, %s1683_s17  ;;  %v1466_v55 = vsel %vm612_vm0, 1.0, %v2984_v13  ;;  %s1686_s25 = smov 77   ;;  %v739_v30 = vrot.slane %v2619_v58, 6  ;;  %vm1209_vm0 = vcmask 1006592  }
 0x330   :  { %v623_v14 = vrot.slane %v1466_v55, 6  ;;  %v687_v57 = vadd.f32 %v685_v20, %v659_v28 }
 0x332   :  { %v624_v9 = vsel %vm250_vm5, %v1465_v32, %v623_v14  ;;  %v832_v14 = vrot.slane %v831_v15, 6 }
 0x334   :  { %v833_v28 = vsel %vm169_vm4, %v832_v14, %v831_v15 }
 0x335   :  { %v584_v37 = vpop.permute.xlu0 %583 }
 0x336   :  { %v585_v63 = vrot.slane %v584_v37, 6  ;;  %v1024_v54 = vpop.permute.xlu2 %1023 }
 0x337   :  { %568 = vrot.lane.b32.xlu2 %v2510_v40, %s2939_s1  ;;  %v775_v31 = vpop.permute.xlu1 %774  ;;  %s1687_s1 = smov 127  }
 0x338   :  { %v586_v6 = vsel %vm571_vm11, %v585_v63, %v584_v37  ;;  %v776_v33 = vrot.slane %v775_v31, 2  ;;  %v713_v37 = vsel %vm169_vm4, %v712_v12, %v711_v49 }
 0x339   :  { %v588_v19 = vadd.f32 %v586_v6, %v557_v7  ;;  %v715_v55 = vadd.f32 %v713_v37, %v687_v57  ;;  %v861_v37 = vsel %vm860_vm8, %v859_v60, %v2617_v46 }
 0x33a   :  { %v777_v18 = vsel %vm540_vm10, %v775_v31, %v776_v33  ;;  %v741_v31 = vsel %vm740_vm2, %v739_v30, %v2619_v58  ;;  %v1025_v33 = vrot.slane %v1024_v54, 6 }
 0x33b   :  { %604 = vrot.lane.b32.xlu0 %v588_v19, %s1683_s17  ;;  %v779_v6 = vadd.f32 %v777_v18, %v2503_v56 }
 0x33d   :  { %v996_v48 = vpop.permute.xlu0 %995 }
 0x33e   :  { %v2672_v35 = vpop.permute.xlu2 %952  ;;  %v997_v19 = vrot.slane %v996_v48, 2 }
 0x33f   :  { %625 = vrot.lane.b32.xlu2 %v624_v9, %s1686_s25  ;;  %v803_v36 = vpop.permute.xlu1 %802  ;;  %v954_v30 = vrot.slane %v2672_v35, 6 }
 0x340   :  { %v804_v53 = vrot.slane %v803_v36, 6  ;;  %v998_v56 = vsel %vm540_vm10, %v996_v48, %v997_v19  ;;  %v1080_v19 = vrot.slane %v2621_v61, 6 }
 0x342   :  { %v805_v11 = vsel %vm571_vm11, %v804_v53, %v803_v36 }
 0x343   :  { %v807_v8 = vadd.f32 %v805_v11, %v779_v6 }
 0x345   :  { %v925_v41 = vpop.permute.xlu0 %924  ;;  %v835_v58 = vadd.f32 %v833_v28, %v807_v8 }
 0x346   :  { %v2676_v13 = vpop.permute.xlu2 %1235  ;;  %v926_v20 = vrot.slane %v925_v41, 6 }
 0x347   :  { %v895_v43 = vpop.permute.xlu1 %894  ;;  %v1237_v15 = vrot.slane %v2676_v13, 2 }
 0x348   :  { %v896_v63 = vrot.slane %v895_v43, 2  ;;  %v927_v11 = vsel %vm571_vm11, %v926_v20, %v925_v41 }
 0x349   :  { %v1238_v41 = vsel %vm540_vm10, %v2676_v13, %v1237_v15 }
 0x34a   :  { %v897_v49 = vsel %vm540_vm10, %v895_v43, %v896_v63  ;;  %v1000_v43 = vadd.f32 %v998_v56, %v2535_v34  ;;  %v1240_v20 = vadd.f32 %v1238_v41, %v2533_v21 }
 0x34b   :  { %v899_v53 = vadd.f32 %v897_v49, %v2545_v27  ;;  %v1026_v27 = vsel %vm571_vm11, %v1025_v33, %v1024_v54  ;;  %v955_v54 = vsel %vm169_vm4, %v954_v30, %v2672_v35 }
 0x34d   :  { %v2681_v5 = vpop.permute.xlu0 %1143 }
 0x34e   :  { %v2684_v26 = vpop.permute.xlu2 %1171  ;;  %v1145_v63 = vrot.slane %v2681_v5, 6 }
 0x34f   :  { %v1116_v23 = vpop.permute.xlu1 %1115 }
 0x350   :  { %v1117_v36 = vrot.slane %v1116_v23, 2 }
 0x352   :  { %v1118_v18 = vsel %vm540_vm10, %v1116_v23, %v1117_v36 }
 0x353   :  { %v1120_v34 = vadd.f32 %v1118_v18, %v2562_v22 }
 0x357   :  { %v2674_v40 = vpop.permute.xlu1 %1051 }
 0x358   :  { %v1053_v57 = vrot.slane %v2674_v40, 6 }
 0x35a   :  { %v1054_v23 = vsel %vm169_vm4, %v1053_v57, %v2674_v40 }
 0x35f   :  { %v2678_v10 = vpop.permute.xlu1 %1263 }
 0x360   :  { %v1265_v14 = vrot.slane %v2678_v10, 6 }
 0x367   :  { %v2687_v44 = vpop.permute.xlu1 %1291 }
 0x368   :  { %v1293_v49 = vrot.slane %v2687_v44, 6 }
 0x381   :  { %v2695_v9 = vpop.permute.xlu2 %1178 }
 0x382   :  { %v718_v17 = vpop.permute.xlu0 %717  ;;  %v1180_v35 = vrot.slane %v2695_v9, 2 }
 0x383   :  { %v719_v7 = vrot.slane %v718_v17, 2 }
 0x385   :  { %v720_v32 = vsel %vm607_vm6, %v718_v17, %v719_v7  ;;  %v929_v7 = vadd.f32 %v927_v11, %v899_v53  ;;  %v1294_v53 = vsel %vm169_vm4, %v1293_v49, %v2687_v44 }
 0x386   :  { %v722_v29 = vadd.f32 %v720_v32, %v715_v55  ;;  %v1028_v55 = vadd.f32 %v1026_v27, %v1000_v43  ;;  %v1173_v32 = vrot.slane %v2684_v26, 6 }
 0x387   :  { %v957_v56 = vadd.f32 %v955_v54, %v929_v7 }
 0x388   :  { %v838_v62 = vpop.permute.xlu1 %837  ;;  %v743_v24 = vmul.f32 %v741_v31, %v722_v29  ;;  %v1146_v29 = vsel %vm571_vm11, %v1145_v63, %v2681_v5  ;;  %v1056_v31 = vadd.f32 %v1054_v23, %v1028_v55  ;;  %v1082_v5 = vsel %vm1081_vm9, %v1080_v19, %v2621_v61 }
 0x389   :  { %v839_v12 = vrot.slane %v838_v62, 2  ;;  %v1299_v22 = vpop.permute.xlu2 %1298  ;;  %v1148_v60 = vadd.f32 %v1146_v29, %v1120_v34 }
 0x38a   :  { %745 = vrot.lane.b32.xlu1 %v743_v24, %s1687_s1  ;;  %v1300_v24 = vrot.slane %v1299_v22, 2 }
 0x38b   :  { %v840_v48 = vsel %vm607_vm6, %v838_v62, %v839_v12  ;;  %v1266_v62 = vsel %vm571_vm11, %v1265_v14, %v2678_v10  ;;  %v1181_v10 = vsel %vm607_vm6, %v2695_v9, %v1180_v35 }
 0x38c   :  { %v842_v17 = vadd.f32 %v840_v48, %v835_v58  ;;  %v1174_v58 = vsel %vm169_vm4, %v1173_v32, %v2684_v26  ;;  %v1268_v43 = vadd.f32 %v1266_v62, %v1240_v20  ;;  %v1301_v48 = vsel %vm607_vm6, %v1299_v22, %v1300_v24 }
 0x38d   :  { %v1176_v18 = vadd.f32 %v1174_v58, %v1148_v60 }
 0x38e   :  { %v863_v6 = vmul.f32 %v861_v37, %v842_v17  ;;  %v1296_v61 = vadd.f32 %v1294_v53, %v1268_v43 }
 0x38f   :  { %v1183_v15 = vadd.f32 %v1181_v10, %v1176_v18 }
 0x390   :  { %v960_v8 = vpop.permute.xlu1 %959  ;;  %865 = vrot.lane.b32.xlu0 %v863_v6, %s1688_s26  ;;  %v1303_v26 = vadd.f32 %v1301_v48, %v1296_v61 }
 0x391   :  { %v1059_v46 = vpop.permute.xlu0 %1058  ;;  %v961_v36 = vrot.slane %v960_v8, 2  ;;  %v569_v63 = vpop.permute.xlu2 %568 }
 0x392   :  { %v1060_v40 = vrot.slane %v1059_v46, 2  ;;  %v570_v34 = vrot.slane %v569_v63, 6 }
 0x393   :  { %v962_v28 = vsel %vm607_vm6, %v960_v8, %v961_v36 }
 0x394   :  { %v1061_v13 = vsel %vm607_vm6, %v1059_v46, %v1060_v40  ;;  %v964_v12 = vadd.f32 %v962_v28, %v957_v56  ;;  %v572_v14 = vsel %vm571_vm11, %v570_v34, %v569_v63  ;;  %vm868_vm11 = vcmask 1031168  }
 0x395   :  { %v1063_v33 = vadd.f32 %v1061_v13, %v1056_v31 }
 0x396   :  { %966 = vrot.lane.b32.xlu2 %v964_v12, %s1689_s0 }
 0x397   :  { %v1084_v57 = vmul.f32 %v1082_v5, %v1063_v33 }
 0x398   :  { %v1319_v44 = vpop.permute.xlu1 %1318 }
 0x399   :  { %1086 = vrot.lane.b32.xlu1 %v1084_v57, %s1690_s16  ;;  %v1199_v21 = vpop.permute.xlu0 %1198  ;;  %v1320_v17 = vrot.slane %v1319_v44, 6  ;;  %v626_v31 = vpop.permute.xlu2 %625 }
 0x39a   :  { %v1200_v30 = vrot.slane %v1199_v21, 6  ;;  %v627_v36 = vrot.slane %v626_v31, 6 }
 0x39b   :  { %v1322_v27 = vsel %vm1321_vm13, %v1320_v17, %v1319_v44  ;;  %v1334_v17 = vstv %s2985_s10  ;;  %vm1359_vm13 = vcmask 1040384  }
 0x39c   :  { %v1202_v37 = vsel %vm1201_vm12, %v1200_v30, %v1199_v21  ;;  %v1324_v9 = vmul.f32 %v1322_v27, %v1303_v26  ;;  %vm456_vm12 = vcmask 1042434  }
 0x39d   :  { %v1204_v11 = vmul.f32 %v1202_v37, %v1183_v15 }
 0x39e   :  { %1326 = vrot.lane.b32.xlu2 %v1324_v9, %s1692_s5 }
 0x39f   :  { %1206 = vrot.lane.b32.xlu0 %v1204_v11, %s1691_s28 }
 0x3a0   :  { %v598_v6 = vpop.permute.xlu1 %597 }
 0x3a1   :  { %v538_v7 = vpop.permute.xlu0 %537  ;;  %v599_v46 = vrot.slane %v598_v6, 6 }
 0x3a2   :  { %v539_v23 = vrot.slane %v538_v7, 2 }
 0x3a3   :  { %v600_v32 = vsel %vm169_vm4, %v599_v46, %v598_v6  ;;  %vm969_vm4 = vcmask 1022976  }
 0x3a4   :  { %v541_v19 = vsel %vm540_vm10, %v538_v7, %v539_v23  ;;  %vm748_vm10 = vcmask 1039360  }
 0x3a5   :  { %v543_v55 = vadd.f32 %v541_v19, %v2567_v25  ;;  %v629_v25 = vsel %vm628_vm14, %v627_v36, %v626_v31  ;;  %vm1365_vm14 = vcmask 1042433  }
 0x3a7   :  { %v574_v54 = vadd.f32 %v572_v14, %v543_v55 }
 0x3a9   :  { %v602_v8 = vadd.f32 %v600_v32, %v574_v54 }
 0x3ad   :  { %v605_v41 = vpop.permute.xlu0 %604 }
 0x3ae   :  { %v606_v22 = vrot.slane %v605_v41, 2 }
 0x3b0   :  { %v608_v40 = vsel %vm607_vm6, %v605_v41, %v606_v22 }
 0x3b1   :  { %v610_v29 = vadd.f32 %v608_v40, %v602_v8 }
 0x3b3   :  { %v631_v24 = vmul.f32 %v629_v25, %v610_v29 }
 0x3f0   :  { %v967_v56 = vpop.permute.xlu2 %966 }
 0x3f1   :  { %v968_v20 = vrot.slane %v967_v56, 2 }
 0x3f3   :  { %v970_v58 = vsel %vm969_vm4, %v967_v56, %v968_v20 }
 0x3f8   :  { %v1327_v57 = vpop.permute.xlu2 %1326 }
 0x3f9   :  { %v1328_v48 = vrot.slane %v1327_v57, 2 }
 0x3fb   :  { %v1330_v15 = vsel %vm1329_vm1, %v1327_v57, %v1328_v48 }
 0x3fc   :  { %v746_v49 = vpop.permute.xlu1 %745 }
 0x3fd   :  { %v747_v60 = vrot.slane %v746_v49, 2 }
 0x3ff   :  { %v749_v62 = vsel %vm748_vm10, %v746_v49, %v747_v60 }
 0x400   :  { %v751_v33 = vadd.f32 %v749_v62, %v631_v24 }
 0x402   :  { %v866_v35 = vpop.permute.xlu0 %865 }
 0x403   :  { %v867_v13 = vrot.slane %v866_v35, 2 }
 0x405   :  { %v869_v28 = vsel %vm868_vm11, %v866_v35, %v867_v13 }
 0x406   :  { %v871_v53 = vadd.f32 %v869_v28, %v751_v33 }
 0x408   :  { %v972_v10 = vadd.f32 %v970_v58, %v871_v53 }
 0x40b   :  { %v1087_v5 = vpop.permute.xlu1 %1086 }
 0x40c   :  { %v1088_v12 = vrot.slane %v1087_v5, 2 }
 0x40e   :  { %v1090_v43 = vsel %vm1089_vm15, %v1087_v5, %v1088_v12 }
 0x40f   :  { %v1092_v61 = vadd.f32 %v1090_v43, %v972_v10 }
 0x411   :  { %v1207_v18 = vpop.permute.xlu0 %1206 }
 0x412   :  { %v1208_v21 = vrot.slane %v1207_v18, 2 }
 0x414   :  { %v1210_v44 = vsel %vm1209_vm0, %v1207_v18, %v1208_v21 }
 0x415   :  { %v1212_v30 = vadd.f32 %v1210_v44, %v1092_v61 }
 0x417   :  { %v1332_v26 = vadd.f32 %v1330_v15, %v1212_v30 }
 0x419   :  { %v1335_v37 = vadd.f32 %v1334_v17, %v1332_v26 }
 0x41b   :  { %v1561_v27 = vmul.f32 -1.442695, %v1335_v37 }
 0x41d   :  { %1601 = vpow2.f32 %v1561_v27 }
 0x423   :  { %v1602_v11 = vpop.eup %1601 }
 0x424   :  { %v1339_v9 = vadd.f32 1.0, %v1602_v11 }
 0x426   :  { %1603 = vrcp.f32 %v1339_v9  ;;  %v1351_v23 = vand.u32 2147483648, %v1339_v9  ;;  %v1349_v19 = vand.u32 2147483647, %v1339_v9  ;;  %vm1345_vm6 = vweird.f32 %v1339_v9 }
 0x428   :  { %v1352_v14 = vor.u32 1.1754944e-38, %v1351_v23  ;;  %vm1350_vm9 = vcmp.eq.f32.partialorder %v1349_v19, 8.507059e+37 }
 0x42c   :  { %v1604_v63 = vpop.eup %1603 }
 0x42d   :  { %v1341_v7 = vmul.f32 %v1604_v63, %v1339_v9  ;;  %vm1346_vm2 = vweird.f32 %v1604_v63 }
 0x42e   :  { %vm1347_vm8 = vmor %vm1345_vm6, %vm1346_vm2 }
 0x42f   :  { %v1342_v34 = vsub.f32 1.0, %v1341_v7 }
 0x431   :  { %v1343_v6 = vmul.f32 %v1604_v63, %v1342_v34 }
 0x433   :  { %v1344_v55 = vadd.f32 %v1604_v63, %v1343_v6 }
 0x435   :  { %v1348_v46 = vsel %vm1347_vm8, %v1604_v63, %v1344_v55 }
 0x436   :  { %v1353_v54 = vsel %vm1350_vm9, %v1352_v14, %v1348_v46 }
 0x437   :  { %v1356_v41 = vrot.slane %v1353_v54, 1  ;;  %v1357_v32 = vrot.slane %v1353_v54, 2  ;;  %v1358_v22 = vrot.slane %v1353_v54, 3 }
 0x439   :  { %v1360_v8 = vsel %vm1359_vm13, %v1353_v54, %v1356_v41  ;;  %v1361_v40 = vsel %vm456_vm12, %v1357_v32, %v1358_v22  ;;  %v1363_v29 = vsel %vm167_vm3, %v1353_v54, %v1356_v41  ;;  %v1364_v31 = vsel %vm463_vm7, %v1357_v32, %v1358_v22 }
 0x43a   :  { %v1362_v49 = vsel %vm250_vm5, %v1360_v8, %v1361_v40  ;;  %v1366_v56 = vsel %vm1365_vm14, %v1363_v29, %v1364_v31  ;;  %vm1386_vm3 = vcmask 416768  }
 0x43b   :  { %v1370_v36 = vperm.slane %v1362_v49, 2  ;;  %v1369_v60 = vperm.slane %v1362_v49, 1  ;;  %v1368_v35 = vperm.slane %v1362_v49, 0  ;;  %v1367_v25 = vrot.slane %v1366_v56, 1 }
 0x43d   :  { %1378 = vrot.lane.b32.xlu2 %v1370_v36, %s1693_s7  ;;  %1376 = vrot.lane.b32.xlu0 %v1369_v60, %s1693_s7  ;;  %v1373_v13 = vperm.slane %v1367_v25, 2  ;;  %v1372_v62 = vperm.slane %v1367_v25, 1  ;;  %v1371_v24 = vperm.slane %v1367_v25, 0 }
 0x43e   :  { %1374 = vrot.lane.b32.xlu1 %v1368_v35, %s1693_s7 }
 0x445   :  { %1384 = vrot.lane.b32.xlu2 %v1373_v13, %s1693_s7  ;;  %1382 = vrot.lane.b32.xlu0 %v1372_v62, %s1693_s7 }
 0x446   :  { %1380 = vrot.lane.b32.xlu1 %v1371_v24, %s1693_s7 }
 0x497   :  { %v1379_v28 = vpop.permute.xlu2 %1378 }
 0x49f   :  { %v1385_v21 = vpop.permute.xlu2 %1384 }
 0x4af   :  { %v1377_v33 = vpop.permute.xlu0 %1376 }
 0x4b0   :  { %v1388_v5 = vsel %vm1386_vm3, %v1377_v33, %v1379_v28  ;;  %v1375_v20 = vpop.permute.xlu1 %1374 }
 0x4b1   :  { %v1396_v12 = vmul.f32 %v1388_v5, %v1867_v38  ;;  %v1398_v53 = vmul.f32 %v1388_v5, %v1876_v42  ;;  %v1400_v57 = vmul.f32 %v1388_v5, %v1899_v2  ;;  %v1402_v58 = vmul.f32 %v1388_v5, %v1915_v51 }
 0x4b2   :  { %v1387_v43 = vsel %vm1386_vm3, %v1375_v20, %v1377_v33 }
 0x4b3   :  { %1412 = vst [vmem:[#allocation10 + $0x8] sm:$0xff] %v1396_v12  ;;  %v1395_v10 = vmul.f32 %v1387_v43, %v1882_v4  ;;  %v1397_v18 = vmul.f32 %v1387_v43, %v1891_v45  ;;  %v1399_v48 = vmul.f32 %v1387_v43, %v1912_v50  ;;  %v1401_v38 = vmul.f32 %v1387_v43, %v1921_v52 }
 0x4b4   :  { %1414 = vst [vmem:[#allocation10 + $0x18] sm:$0xff] %v1398_v53 }
 0x4b5   :  { %1416 = vst [vmem:[#allocation10 + $0x28] sm:$0xff] %v1400_v57 }
 0x4b6   :  { %1418 = vst [vmem:[#allocation10 + $0x38] sm:$0xff] %v1402_v58 }
 0x4b7   :  { %1411 = vst [vmem:[#allocation10] sm:$0xff] %v1395_v10  ;;  %v1383_v42 = vpop.permute.xlu0 %1382 }
 0x4b8   :  { %1413 = vst [vmem:[#allocation10 + $0x10] sm:$0xff] %v1397_v18  ;;  %v1390_v2 = vsel %vm1386_vm3, %v1383_v42, %v1385_v21  ;;  %v1381_v51 = vpop.permute.xlu1 %1380 }
 0x4b9   :  { %1415 = vst [vmem:[#allocation10 + $0x20] sm:$0xff] %v1399_v48  ;;  %v1404_v61 = vmul.f32 %v1390_v2, %v1954_v3  ;;  %v1406_v4 = vmul.f32 %v1390_v2, %v1965_v16  ;;  %v1408_v45 = vmul.f32 %v1390_v2, %v1974_v39  ;;  %v1410_v50 = vmul.f32 %v1390_v2, %v2015_v47  ;;  %v2987_v3 = vld [vmem:[#allocation33_spill] sm:$0xff] }
 0x4ba   :  { %1417 = vst [vmem:[#allocation10 + $0x30] sm:$0xff] %v1401_v38  ;;  %v1389_v44 = vsel %vm1386_vm3, %v1381_v51, %v1383_v42 }
 0x4bb   :  { %1420 = vst [vmem:[#allocation10 + $0x48] sm:$0xff] %v1404_v61  ;;  %v1403_v52 = vmul.f32 %v1389_v44, %v1948_v59  ;;  %v1405_v30 = vmul.f32 %v1389_v44, %v1961_v0  ;;  %v1407_v15 = vmul.f32 %v1389_v44, %v1971_v1  ;;  %v1409_v16 = vmul.f32 %v1389_v44, %v2987_v3 }
 0x4bc   :  { %1422 = vst [vmem:[#allocation10 + $0x58] sm:$0xff] %v1406_v4 }
 0x4bd   :  { %1424 = vst [vmem:[#allocation10 + $0x68] sm:$0xff] %v1408_v45 }
 0x4be   :  { %1426 = vst [vmem:[#allocation10 + $0x78] sm:$0xff] %v1410_v50 }
 0x4bf   :  { %1419 = vst [vmem:[#allocation10 + $0x40] sm:$0xff] %v1403_v52 }
 0x4c0   :  { %1421 = vst [vmem:[#allocation10 + $0x50] sm:$0xff] %v1405_v30 }
 0x4c1   :  { %1423 = vst [vmem:[#allocation10 + $0x60] sm:$0xff] %v1407_v15 }
 0x4c2   :  { %1425 = vst [vmem:[#allocation10 + $0x70] sm:$0xff] %v1409_v16 }
 0x4c3   :  { %1439 = dma.vmem_to_hbm [thread:$0]  %s1432_s4, 2048, %s1434_s19, [#allocation7], %s2989_s14, %s2989_s14, %s2988_s13  }
 0x4c4   :  { %1669 = dma.done.wait [#allocation7], 2048  }
 0x4c5   :  { %1670 = vsyncadd [#allocation7], 4294965248 }
 0x4c6   :  { %1444 = vsyncpa [#allocation6], 1 }
 0x4c7   :  { %1445 = vsyncpa [#allocation7], 1 }
 0x4c8   :  { %1446 = vsyncpa [#allocation8], 1 }

</bundles_post_ra>
